<compile_context>
chip_gen: v5e
topology: v5e:2x2
jax: 0.10.0
libtpu: 0.0.40
codegen_flags: <defaults>
</compile_context>

<pallas_src>
import jax
import jax.numpy as jnp
import numpy as np
from jax.experimental import pallas as pl
from jax.experimental.pallas import tpu as pltpu


# --------------------------- host-side helpers ------------------------------

def _interp_matrix(in_size, out_size):
    """PyTorch align_corners=True linear interpolation as a dense (out, in) matrix."""
    m = np.zeros((out_size, in_size), dtype=np.float32)
    for o in range(out_size):
        src = 0.0 if out_size == 1 else o * (in_size - 1) / (out_size - 1)
        i0 = min(int(np.floor(src)), in_size - 1)
        i1 = min(i0 + 1, in_size - 1)
        w1 = src - i0
        m[o, i0] += 1.0 - w1
        m[o, i1] += w1
    return m


def _choose_tb(nc, di, do, cap=8):
    """Volumes per grid step: divisor of nc, 8-aligned sublane blocks, >=2 grid steps."""
    for tb in range(min(cap, nc), 0, -1):
        if nc % tb == 0 and nc // tb >= 2 and (tb * di) % 8 == 0 and (tb * do) % 8 == 0:
            return tb
    return nc  # single grid step; block == full array dims so always layout-legal


# ------------------------------ Pallas kernel -------------------------------

def _resize_kernel(x_ref, mk_ref, bd_ref, o_ref):
    # x: (tb*Di, Hi*Wi)  mk: (Hi*Wi, Ho*Wo)  bd: (tb*Do, tb*Di)  o: (tb*Do, Ho*Wo)
    # Stage 1: fused H/W interpolation (lane contraction on the MXU).
    t = jnp.dot(x_ref[...], mk_ref[...], preferred_element_type=jnp.float32)
    # Stage 2: block-diagonal D interpolation for all tb volumes at once;
    # factor is pre-folded into bd, so the store is a plain cast.
    o_ref[...] = jnp.dot(bd_ref[...], t,
                         preferred_element_type=jnp.float32).astype(o_ref.dtype)


# -------------------------------- wrapper ------------------------------------

def resize_transform_forward(x, vel_resize):
    """x: (N, C, D, H, W) float32.  Equivalent of ResizeTransform(vel_resize, ndims=3)."""
    factor = 1.0 / float(vel_resize)
    if factor == 1.0:
        return x
    # TODO(synk): only the ndims==3 ('trilinear') mode is implemented; the
    # ndims==1/2 ('linear'/'bilinear') branches of the module are not ported.
    n, c, d, h, w = x.shape
    do_ = int(np.floor(d * factor))
    ho = int(np.floor(h * factor))
    wo = int(np.floor(w * factor))

    nc = n * c
    tb = _choose_tb(nc, d, do_)

    # Host-built (numpy) constant matrices; scaling folded in for free.
    md = factor * _interp_matrix(d, do_)                                  # (Do, Di)
    bd = jnp.asarray(np.kron(np.eye(tb, dtype=np.float32), md))           # (tb*Do, tb*Di)
    mk = jnp.asarray(np.kron(_interp_matrix(h, ho),
                             _interp_matrix(w, wo)).T.copy())             # (Hi*Wi, Ho*Wo)

    x2 = x.reshape(nc * d, h * w).astype(jnp.float32)                     # pure view

    out2 = pl.pallas_call(
        _resize_kernel,
        out_shape=jax.ShapeDtypeStruct((nc * do_, ho * wo), jnp.float32),
        grid_spec=pltpu.PrefetchScalarGridSpec(
            num_scalar_prefetch=0,
            grid=(nc // tb,),
            in_specs=[pl.BlockSpec((tb * d, h * w), lambda i: (i, 0)),
                      pl.BlockSpec((h * w, ho * wo), lambda i: (0, 0)),
                      pl.BlockSpec((tb * do_, tb * d), lambda i: (0, 0))],
            out_specs=pl.BlockSpec((tb * do_, ho * wo), lambda i: (i, 0))),
        compiler_params=pltpu.CompilerParams(
            dimension_semantics=("parallel",)),
    )(x2, mk, bd)

    return out2.reshape(n, c, do_, ho, wo)


# ---------------- pure-JAX reference (independent gather formulation) --------

def _interp_axis_ref(x, axis, out_size):
    in_size = x.shape[axis]
    o = jnp.arange(out_size, dtype=jnp.float32)
    src = o * (in_size - 1) / max(out_size - 1, 1)
    i0 = jnp.clip(jnp.floor(src).astype(jnp.int32), 0, in_size - 1)
    i1 = jnp.clip(i0 + 1, 0, in_size - 1)
    w1 = src - i0.astype(jnp.float32)
    shape = [1] * x.ndim
    shape[axis] = out_size
    x0 = jnp.take(x, i0, axis=axis)
    x1 = jnp.take(x, i1, axis=axis)
    return x0 * (1.0 - w1).reshape(shape) + x1 * w1.reshape(shape)


def reference_forward(x, vel_resize):
    factor = 1.0 / float(vel_resize)
    if factor == 1.0:
        return x
    n, c, d, h, w = x.shape
    y = _interp_axis_ref(x, 2, int(np.floor(d * factor)))
    y = _interp_axis_ref(y, 3, int(np.floor(h * factor)))
    y = _interp_axis_ref(y, 4, int(np.floor(w * factor)))
    return factor * y


# ---------------------------------- main -------------------------------------

if __name__ == "__main__":
    key = jax.random.PRNGKey(0)
    n, c, d, h, w = 2, 3, 16, 16, 16          # (N, ndims, D, H, W) velocity field
    x = jax.random.normal(key, (n, c, d, h, w), dtype=jnp.float32)

    for vel_resize in (0.5, 2.0):             # factor = 2.0 (upsample), 0.5 (downsample)
        out = jax.block_until_ready(resize_transform_forward(x, vel_resize))
        ref = jax.block_until_ready(reference_forward(x, vel_resize))
        assert out.shape == ref.shape, (out.shape, ref.shape)
        np.testing.assert_allclose(np.asarray(out), np.asarray(ref),
                                   atol=2e-2, rtol=2e-2)

    # factor == 1 identity path
    same = jax.block_until_ready(resize_transform_forward(x, 1.0))
    np.testing.assert_allclose(np.asarray(same), np.asarray(x))

    print("KERNEL_OK")
</pallas_src>

<mosaic_0001>
module attributes {stable_mosaic.version = 11 : i64} {
  func.func @_resize_kernel(%arg0: i32, %arg1: memref<48x256xf32, #tpu.memory_space<vmem>>, %arg2: memref<256x1024xf32, #tpu.memory_space<vmem>>, %arg3: memref<96x48xf32, #tpu.memory_space<vmem>>, %arg4: memref<96x1024xf32, #tpu.memory_space<vmem>>) attributes {dimension_semantics = [#tpu.dimension_semantics<parallel>], iteration_bounds = array<i64: 2>, scalar_prefetch = 0 : i64, scratch_operands = 0 : i64, tpu.core_type = #tpu.core_type<tc>, window_params = [{transform_indices = @transform_0, window_bounds = array<i64: 48, 256>}, {pipeline_mode = #tpu.pipeline_mode<synchronous>, transform_indices = @transform_1, window_bounds = array<i64: 256, 1024>}, {pipeline_mode = #tpu.pipeline_mode<synchronous>, transform_indices = @transform_2, window_bounds = array<i64: 96, 48>}, {transform_indices = @transform_3, window_bounds = array<i64: 96, 1024>}]} {
    %c0 = arith.constant 0 : index
    %c0_0 = arith.constant 0 : index
    %0 = vector.load %arg1[%c0, %c0_0] : memref<48x256xf32, #tpu.memory_space<vmem>>, vector<48x256xf32>
    %c0_1 = arith.constant 0 : index
    %c0_2 = arith.constant 0 : index
    %1 = vector.load %arg2[%c0_1, %c0_2] : memref<256x1024xf32, #tpu.memory_space<vmem>>, vector<256x1024xf32>
    %cst = arith.constant dense<0.000000e+00> : vector<48x1024xf32>
    %2 = tpu.matmul %0, %1, %cst {dimension_numbers = #tpu.dot_dimension_numbers<[1], [0], [0], [1], [0, 0, 1, 1], [], []>} : vector<48x256xf32>, vector<256x1024xf32>, vector<48x1024xf32> -> vector<48x1024xf32>
    %c0_3 = arith.constant 0 : index
    %c0_4 = arith.constant 0 : index
    %3 = vector.load %arg3[%c0_3, %c0_4] : memref<96x48xf32, #tpu.memory_space<vmem>>, vector<96x48xf32>
    %cst_5 = arith.constant dense<0.000000e+00> : vector<96x1024xf32>
    %4 = tpu.matmul %3, %2, %cst_5 {dimension_numbers = #tpu.dot_dimension_numbers<[1], [0], [0], [1], [0, 0, 1, 1], [], []>} : vector<96x48xf32>, vector<48x1024xf32>, vector<96x1024xf32> -> vector<96x1024xf32>
    %c0_6 = arith.constant 0 : index
    %c0_7 = arith.constant 0 : index
    %5 = vector.load %arg4[%c0_6, %c0_7] : memref<96x1024xf32, #tpu.memory_space<vmem>>, vector<96x1024xf32>
    tpu.vector_store %arg4[%c0_6, %c0_7], %4 {strides = array<i32>} : memref<96x1024xf32, #tpu.memory_space<vmem>>, vector<96x1024xf32>,
    return
  }
  func.func @transform_0(%arg0: i32) -> (i32, i32) {
    %c0_i32 = arith.constant 0 : i32
    %c0_i32_0 = arith.constant 0 : i32
    return %arg0, %c0_i32 : i32, i32
  }
  func.func @transform_1(%arg0: i32) -> (i32, i32) {
    %c0_i32 = arith.constant 0 : i32
    %c0_i32_0 = arith.constant 0 : i32
    %c0_i32_1 = arith.constant 0 : i32
    return %c0_i32, %c0_i32_0 : i32, i32
  }
  func.func @transform_2(%arg0: i32) -> (i32, i32) {
    %c0_i32 = arith.constant 0 : i32
    %c0_i32_0 = arith.constant 0 : i32
    %c0_i32_1 = arith.constant 0 : i32
    return %c0_i32, %c0_i32_0 : i32, i32
  }
  func.func @transform_3(%arg0: i32) -> (i32, i32) {
    %c0_i32 = arith.constant 0 : i32
    %c0_i32_0 = arith.constant 0 : i32
    return %arg0, %c0_i32 : i32, i32
  }
}

</mosaic_0001>

<bundles_post_ra>
// kernel: tpu_custom_call.1
= control target key start
LH: loop header
LB: loop body
LE: loop exit
PB: predicated region body
PF: predicated region fallthrough
CT: control target
= control target key end

     0   :  { %8 = vsyncpa [#allocation3], 0  ;;  %s2728_s0 = inlined_call_operand.hbm [shape: f32[96,256], index: 0, kind: input, shape index: {}]   ;;  %s2729_s1 = inlined_call_operand.hbm [shape: f32[256,1024], index: 1, kind: input, shape index: {}]   ;;  %s2730_s2 = inlined_call_operand.vmem [shape: f32[96,48], index: 2, kind: input, shape index: {}]   ;;  %s2731_s3 = inlined_call_operand.hbm [shape: f32[192,1024], index: 3, kind: output, shape index: {}]  }
   0x1   :  { %10 = vsyncpa [#allocation3 + $0x1], 0 }
   0x2   :  { %11 = vsyncpa [#allocation6], 0 }
   0x3   :  { %12 = vsyncpa [#allocation4], 0 }
   0x4   :  { %14 = vsyncpa [#allocation4 + $0x1], 0  ;;  %s2047_s12 = smov 0   ;;  %s2049_s13 = smov 0  }
   0x5   :  { %s2051_s14 = smov 0   ;;  %s2053_s15 = smov 0  }
   0x6 LB: > { %s2068_s16 = sadd.s32 4294967295, %s2018_s15   ;;  %s1708_s17 = sadd.s32 4294967294, %s2018_s15   ;;  %s2018_s15 = sphi %s2053_s15, %s2741_s15   ;;  %s2014_s14 = sphi %s2051_s14, %s2740_s14   ;;  %s2010_s13 = sphi %s2049_s13, %s2739_s13   ;;  %s2006_s12 = sphi %s2047_s12, %s2738_s12  }
   0x7   : > { %p40_p0 = scmp.ne.s32.totalorder %s2010_s13, %s2006_s12  ;;  %p41_p1 = scmp.eq.s32.totalorder %s2068_s16, 0 }
   0x8   : > { %p106_p2 = scmp.eq.s32.totalorder %s2068_s16, 1  ;;  %p112_p3 = scmp.eq.s32.totalorder %s1708_s17, 1 }
   0x9   : > { %p2077_p4 = por %p41_p1, %p40_p0  ;;  %p1709_p5 = scmp.ge.s32.totalorder %s2018_s15, 1 }
   0xa   : > { %p2082_p6 = por %p112_p3, %p40_p0  ;;  %p119_p7 = scmp.lt.s32.totalorder %s2018_s15, 3 }
   0xb   : > { %s130_s22 = sshll.u32 %s2729_s1, 4  ;;  %s2020_s24 = smov [#allocation5]   ;;  %s131_s22 = int_to_ptr.hbm [resolvable:$true] %s130_s22 }
   0xc   : > { %p2090_p8 = pnand %p1709_p5, %p119_p7  ;;  %s132_s25 = sshll.u32 %s2020_s24, 4  ;;  %s133_s25 = int_to_ptr.vmem [resolvable:$true] %s132_s25 }
   0xd   : > { %s2100_s26 = sadd.s32 1, %s2018_s15   ;;  %s2021_s27 = smov 1024  }
   0xe   : > { %p1833_p9 = pneg %p2090_p8  ;;  %s2022_s28 = smov 64  }
   0xf   : > { %s24_s29 = ssub.s32 %s2018_s15, %s2100_s26  ;;  %s27_s30 = sadd.s32 1, %s2014_s14 }
  0x10   : > { %p1834_p10 = pnand %p1833_p9, %p41_p1  ;;  %p25_p12 = scmp.eq.s32.totalorder %s24_s29, 0 }
  0x11   : > { %p34_p13 = scmp.ne.s32.totalorder %s2014_s14, %s2010_s13  ;;  %p35_p0 = scmp.eq.s32.totalorder %s2018_s15, 0 }
  0x12   : > { %1836 = dma.hbm_to_vmem [thread:$0]  (!%p1834_p10), %s131_s22, 32768, %s133_s25, [#allocation6], %s2021_s27, %s2021_s27, %s2022_s28  }
  0x13   : > { %p1846_p3 = scmp.lt.s32.totalorder %s2018_s15, 2  ;;  %p36_p5 = por %p35_p0, %p34_p13 }
  0x14   : > { %s2110_s4 = scalar_select %p25_p12, %s2014_s14, %s27_s30  }
  0x15   : > { %p2114_p7 = por %p106_p2, %p34_p13  ;;  %s149_s6 = sand.u32 1, %s2014_s14  }
  0x16   : > { %s1820_s7 = smul.u32 96, %s2018_s15  ;;  %p2123_p9 = pnand %p1846_p3, %p36_p5 }
  0x17   : > { %s1822_s8 = smul.u32 96, %s149_s6  ;;  %s150_s24 = scalar_lea.sflag [#allocation3], %s149_s6 }
  0x18   : > { %s159_s11 = scalar_lea.hbm %s2728_s0, %s1820_s7  ;;  %p1922_p10 = pneg %p2123_p9 }
  0x19   : > { %s160_s20 = sshll.u32 %s159_s11, 4  ;;  %s153_s21 = scalar_lea.vmem [#allocation2], %s1822_s8  ;;  %s161_s20 = int_to_ptr.hbm [resolvable:$true] %s160_s20 }
  0x1a   : > { %s162_s22 = sshll.u32 %s153_s21, 4  ;;  %s1918_s25 = sshra.s32 %s161_s20, 4  ;;  %s163_s22 = int_to_ptr.vmem [resolvable:$true] %s162_s22  ;;  %s1919_s25 = int_to_ptr.hbm [resolvable:$true] %s1918_s25 }
  0x1b   : > { %s1920_s27 = scalar_lea.hbm %s1919_s25, 96  ;;  %s1925_s30 = scalar_lea.hbm %s2728_s0, 192 }
  0x1c   : > { %p1921_p2 = scmp.ne.s32.totalorder %s1919_s25, %s1920_s27  ;;  %p1926_p0 = scmp.lt.s32.totalorder %s1919_s25, %s2728_s0 }
  0x1d   : > { %p1927_p3 = scmp.lt.s32.totalorder %s1925_s30, %s1920_s27 }
  0x1e   : > { %p1923_p12 = pnand %p1922_p10, %p1921_p2 }
  0x1f   : > { %p1928_p5 = por %p1927_p3, %p1926_p0 }
  0x20   : > { %p1924_p13 = pneg %p1923_p12 }
  0x22   : > { %p1929_p11 = pnand %p1928_p5, %p1924_p13 }
  0x24   : > { %1932 = shalt.err (!%p1929_p11)
}
  0x25   : > { %s2023_s6 = smov 256   ;;  %s2024_s8 = smov 16  }
  0x26   : > { %1840 = dma.hbm_to_vmem [thread:$0]  (!%p2123_p9), %s161_s20, 1536, %s163_s22, %s150_s24, %s2023_s6, %s2023_s6, %s2024_s8  }
  0x27   : > { %174 = sbr.rel (%p2090_p8) target bundleno = 635 (0x27b), region = 32  ;;  %s2140_s10 = sand.u32 (!%p2090_p8), 1, %s2010_s13  }
  0x28   : > { %s1823_s11 = smul.u32 (!%p2090_p8), 96, %s2140_s10  ;;  %s177_s21 = scalar_lea.sflag (!%p2090_p8), [#allocation3], %s2140_s10 }
  0x2a   : > { %s2144_s25 = scalar_lea.vmem (!%p2090_p8), [#allocation2], %s1823_s11 }
  0x2c   : > { %1993 = dma.done.wait (%p2077_p4), %s177_s21, 1536  }
  0x2d   : > { %1995 = vsyncadd (%p2077_p4), %s177_s21, 4294965760 }
  0x2e   : > { %1997 = dma.done.wait (%p41_p1), [#allocation6], 32768  }
  0x2f   : > { %1999 = vsyncadd (%p41_p1), [#allocation6], 4294934528  ;;  %v343_v0 = vld [vmem:[#allocation5 + $0x3c0] sm:$0xff]  ;;  %v344_v2 = vld [vmem:[#allocation5 + $0x3c8] sm:$0xff]  ;;  %vm1051_vm0 = vcmask 392192   ;;  %s1824_s28 = smul.u32 768, %s2140_s10 }
  0x30   : > { %v471_v1 = vld [vmem:[#allocation5 + $0x7c0] sm:$0xff]  ;;  %479 = vmatpush.msra.mxu0 %v343_v0  ;;  %v472_v3 = vld [vmem:[#allocation5 + $0x7c8] sm:$0xff]  ;;  %549 = vmatpush.msra.mxu2 %v344_v2  ;;  %v345_v2 = vld [vmem:[#allocation5 + $0x3d0] sm:$0xff]  ;;  %s1821_s30 = smul.u32 768, %s2068_s16  ;;  %s1609_s21 = scalar_lea.sflag [#allocation4], %s2140_s10 }
  0x31   : > { %514 = vmatpush.msra.mxu1 %v471_v1  ;;  %v335_v4 = vld [vmem:[#allocation5 + $0x380] sm:$0xff]  ;;  %584 = vmatpush.msra.mxu3 %v472_v3  ;;  %v336_v6 = vld [vmem:[#allocation5 + $0x388] sm:$0xff]  ;;  %v473_v3 = vld [vmem:[#allocation5 + $0x7d0] sm:$0xff]  ;;  %s2522_s29 = scalar_lea.vmem [#allocation7], %s1824_s28  ;;  %s1968_s17 = scalar_lea.hbm %s2731_s3, 1536 }
  0x32   : > { %v463_v5 = vld [vmem:[#allocation5 + $0x780] sm:$0xff]  ;;  %v464_v7 = vld [vmem:[#allocation5 + $0x788] sm:$0xff]  ;;  %480 = vmatpush.msra.mxu0 %v335_v4  ;;  %550 = vmatpush.msra.mxu2 %v336_v6  ;;  %v346_v4 = vld [vmem:[#allocation5 + $0x3d8] sm:$0xff]  ;;  %s1621_s6 = scalar_lea.hbm %s2731_s3, %s1821_s30  ;;  %s1622_s8 = sshll.u32 %s2522_s29, 4  ;;  %s1623_s8 = int_to_ptr.vmem [resolvable:$true] %s1622_s8 }
  0x33   : > { %v327_v8 = vld [vmem:[#allocation5 + $0x340] sm:$0xff]  ;;  %515 = vmatpush.msra.mxu1 %v463_v5  ;;  %v328_v10 = vld [vmem:[#allocation5 + $0x348] sm:$0xff]  ;;  %585 = vmatpush.msra.mxu3 %v464_v7  ;;  %v474_v5 = vld [vmem:[#allocation5 + $0x7d8] sm:$0xff]  ;;  %s1624_s11 = sshll.u32 %s1621_s6, 4  ;;  %s1625_s11 = int_to_ptr.hbm [resolvable:$true] %s1624_s11 }
  0x34   : > { %v455_v9 = vld [vmem:[#allocation5 + $0x740] sm:$0xff]  ;;  %v456_v11 = vld [vmem:[#allocation5 + $0x748] sm:$0xff]  ;;  %481 = vmatpush.msra.mxu0 %v327_v8  ;;  %551 = vmatpush.msra.mxu2 %v328_v10  ;;  %v337_v6 = vld [vmem:[#allocation5 + $0x390] sm:$0xff] }
  0x35   : > { %v319_v12 = vld [vmem:[#allocation5 + $0x300] sm:$0xff]  ;;  %516 = vmatpush.msra.mxu1 %v455_v9  ;;  %v320_v14 = vld [vmem:[#allocation5 + $0x308] sm:$0xff]  ;;  %586 = vmatpush.msra.mxu3 %v456_v11  ;;  %v465_v7 = vld [vmem:[#allocation5 + $0x790] sm:$0xff] }
  0x36   : > { %v447_v13 = vld [vmem:[#allocation5 + $0x700] sm:$0xff]  ;;  %v448_v15 = vld [vmem:[#allocation5 + $0x708] sm:$0xff]  ;;  %482 = vmatpush.msra.mxu0 %v319_v12  ;;  %552 = vmatpush.msra.mxu2 %v320_v14  ;;  %v338_v8 = vld [vmem:[#allocation5 + $0x398] sm:$0xff] }
  0x37   : > { %v311_v16 = vld [vmem:[#allocation5 + $0x2c0] sm:$0xff]  ;;  %517 = vmatpush.msra.mxu1 %v447_v13  ;;  %v312_v18 = vld [vmem:[#allocation5 + $0x2c8] sm:$0xff]  ;;  %587 = vmatpush.msra.mxu3 %v448_v15  ;;  %v466_v9 = vld [vmem:[#allocation5 + $0x798] sm:$0xff] }
  0x38   : > { %v439_v17 = vld [vmem:[#allocation5 + $0x6c0] sm:$0xff]  ;;  %v440_v19 = vld [vmem:[#allocation5 + $0x6c8] sm:$0xff]  ;;  %483 = vmatpush.msra.mxu0 %v311_v16  ;;  %553 = vmatpush.msra.mxu2 %v312_v18  ;;  %v329_v10 = vld [vmem:[#allocation5 + $0x350] sm:$0xff] }
  0x39   : > { %v303_v20 = vld [vmem:[#allocation5 + $0x280] sm:$0xff]  ;;  %518 = vmatpush.msra.mxu1 %v439_v17  ;;  %v304_v22 = vld [vmem:[#allocation5 + $0x288] sm:$0xff]  ;;  %588 = vmatpush.msra.mxu3 %v440_v19  ;;  %v457_v11 = vld [vmem:[#allocation5 + $0x750] sm:$0xff] }
  0x3a   : > { %v431_v21 = vld [vmem:[#allocation5 + $0x680] sm:$0xff]  ;;  %v432_v23 = vld [vmem:[#allocation5 + $0x688] sm:$0xff]  ;;  %484 = vmatpush.msra.mxu0 %v303_v20  ;;  %554 = vmatpush.msra.mxu2 %v304_v22  ;;  %v330_v12 = vld [vmem:[#allocation5 + $0x358] sm:$0xff] }
  0x3b   : > { %v295_v24 = vld [vmem:[#allocation5 + $0x240] sm:$0xff]  ;;  %519 = vmatpush.msra.mxu1 %v431_v21  ;;  %v296_v26 = vld [vmem:[#allocation5 + $0x248] sm:$0xff]  ;;  %589 = vmatpush.msra.mxu3 %v432_v23  ;;  %v458_v13 = vld [vmem:[#allocation5 + $0x758] sm:$0xff] }
  0x3c   : > { %v423_v25 = vld [vmem:[#allocation5 + $0x640] sm:$0xff]  ;;  %v424_v27 = vld [vmem:[#allocation5 + $0x648] sm:$0xff]  ;;  %485 = vmatpush.msra.mxu0 %v295_v24  ;;  %555 = vmatpush.msra.mxu2 %v296_v26  ;;  %v2165_v14 = vld [vmem:[%s2144_s25 + $0x10] sm:$0xff] }
  0x3d   : > { %v287_v28 = vld [vmem:[#allocation5 + $0x200] sm:$0xff]  ;;  %520 = vmatpush.msra.mxu1 %v423_v25  ;;  %v288_v30 = vld [vmem:[#allocation5 + $0x208] sm:$0xff]  ;;  %590 = vmatpush.msra.mxu3 %v424_v27  ;;  %v2168_v15 = vld [vmem:[%s2144_s25 + $0x18] sm:$0xff] }
  0x3e   : > { %v415_v29 = vld [vmem:[#allocation5 + $0x600] sm:$0xff]  ;;  %v416_v31 = vld [vmem:[#allocation5 + $0x608] sm:$0xff]  ;;  %486 = vmatpush.msra.mxu0 %v287_v28  ;;  %556 = vmatpush.msra.mxu2 %v288_v30  ;;  %v321_v16 = vld [vmem:[#allocation5 + $0x310] sm:$0xff] }
  0x3f   : > { %v279_v32 = vld [vmem:[#allocation5 + $0x1c0] sm:$0xff]  ;;  %521 = vmatpush.msra.mxu1 %v415_v29  ;;  %v280_v34 = vld [vmem:[#allocation5 + $0x1c8] sm:$0xff]  ;;  %591 = vmatpush.msra.mxu3 %v416_v31  ;;  %v449_v17 = vld [vmem:[#allocation5 + $0x710] sm:$0xff] }
  0x40   : > { %v407_v33 = vld [vmem:[#allocation5 + $0x5c0] sm:$0xff]  ;;  %v408_v35 = vld [vmem:[#allocation5 + $0x5c8] sm:$0xff]  ;;  %487 = vmatpush.msra.mxu0 %v279_v32  ;;  %557 = vmatpush.msra.mxu2 %v280_v34  ;;  %v322_v18 = vld [vmem:[#allocation5 + $0x318] sm:$0xff] }
  0x41   : > { %v271_v36 = vld [vmem:[#allocation5 + $0x180] sm:$0xff]  ;;  %522 = vmatpush.msra.mxu1 %v407_v33  ;;  %v272_v38 = vld [vmem:[#allocation5 + $0x188] sm:$0xff]  ;;  %592 = vmatpush.msra.mxu3 %v408_v35  ;;  %v450_v19 = vld [vmem:[#allocation5 + $0x718] sm:$0xff] }
  0x42   : > { %v399_v37 = vld [vmem:[#allocation5 + $0x580] sm:$0xff]  ;;  %v400_v39 = vld [vmem:[#allocation5 + $0x588] sm:$0xff]  ;;  %488 = vmatpush.msra.mxu0 %v271_v36  ;;  %558 = vmatpush.msra.mxu2 %v272_v38  ;;  %v313_v20 = vld [vmem:[#allocation5 + $0x2d0] sm:$0xff] }
  0x43   : > { %v263_v40 = vld [vmem:[#allocation5 + $0x140] sm:$0xff]  ;;  %523 = vmatpush.msra.mxu1 %v399_v37  ;;  %v264_v42 = vld [vmem:[#allocation5 + $0x148] sm:$0xff]  ;;  %593 = vmatpush.msra.mxu3 %v400_v39  ;;  %v441_v21 = vld [vmem:[#allocation5 + $0x6d0] sm:$0xff] }
  0x44   : > { %v391_v41 = vld [vmem:[#allocation5 + $0x540] sm:$0xff]  ;;  %v392_v43 = vld [vmem:[#allocation5 + $0x548] sm:$0xff]  ;;  %489 = vmatpush.msra.mxu0 %v263_v40  ;;  %559 = vmatpush.msra.mxu2 %v264_v42  ;;  %v314_v22 = vld [vmem:[#allocation5 + $0x2d8] sm:$0xff] }
  0x45   : > { %v255_v44 = vld [vmem:[#allocation5 + $0x100] sm:$0xff]  ;;  %524 = vmatpush.msra.mxu1 %v391_v41  ;;  %v256_v46 = vld [vmem:[#allocation5 + $0x108] sm:$0xff]  ;;  %594 = vmatpush.msra.mxu3 %v392_v43  ;;  %v442_v23 = vld [vmem:[#allocation5 + $0x6d8] sm:$0xff] }
  0x46   : > { %v383_v45 = vld [vmem:[#allocation5 + $0x500] sm:$0xff]  ;;  %v384_v47 = vld [vmem:[#allocation5 + $0x508] sm:$0xff]  ;;  %490 = vmatpush.msra.mxu0 %v255_v44  ;;  %560 = vmatpush.msra.mxu2 %v256_v46  ;;  %v305_v24 = vld [vmem:[#allocation5 + $0x290] sm:$0xff] }
  0x47   : > { %v247_v48 = vld [vmem:[#allocation5 + $0xc0] sm:$0xff]  ;;  %525 = vmatpush.msra.mxu1 %v383_v45  ;;  %v248_v50 = vld [vmem:[#allocation5 + $0xc8] sm:$0xff]  ;;  %595 = vmatpush.msra.mxu3 %v384_v47  ;;  %v433_v25 = vld [vmem:[#allocation5 + $0x690] sm:$0xff] }
  0x48   : > { %v375_v49 = vld [vmem:[#allocation5 + $0x4c0] sm:$0xff]  ;;  %v376_v51 = vld [vmem:[#allocation5 + $0x4c8] sm:$0xff]  ;;  %491 = vmatpush.msra.mxu0 %v247_v48  ;;  %561 = vmatpush.msra.mxu2 %v248_v50  ;;  %v306_v26 = vld [vmem:[#allocation5 + $0x298] sm:$0xff] }
  0x49   : > { %v239_v52 = vld [vmem:[#allocation5 + $0x80] sm:$0xff]  ;;  %526 = vmatpush.msra.mxu1 %v375_v49  ;;  %v240_v54 = vld [vmem:[#allocation5 + $0x88] sm:$0xff]  ;;  %596 = vmatpush.msra.mxu3 %v376_v51  ;;  %v434_v27 = vld [vmem:[#allocation5 + $0x698] sm:$0xff] }
  0x4a   : > { %v367_v53 = vld [vmem:[#allocation5 + $0x480] sm:$0xff]  ;;  %v368_v55 = vld [vmem:[#allocation5 + $0x488] sm:$0xff]  ;;  %492 = vmatpush.msra.mxu0 %v239_v52  ;;  %562 = vmatpush.msra.mxu2 %v240_v54  ;;  %v297_v30 = vld [vmem:[#allocation5 + $0x250] sm:$0xff] }
  0x4b   : > { %v231_v56 = vld [vmem:[#allocation5 + $0x40] sm:$0xff]  ;;  %527 = vmatpush.msra.mxu1 %v367_v53  ;;  %v232_v58 = vld [vmem:[#allocation5 + $0x48] sm:$0xff]  ;;  %597 = vmatpush.msra.mxu3 %v368_v55  ;;  %v425_v31 = vld [vmem:[#allocation5 + $0x650] sm:$0xff] }
  0x4c   : > { %v359_v57 = vld [vmem:[#allocation5 + $0x440] sm:$0xff]  ;;  %v360_v59 = vld [vmem:[#allocation5 + $0x448] sm:$0xff]  ;;  %493 = vmatpush.msra.mxu0 %v231_v56  ;;  %563 = vmatpush.msra.mxu2 %v232_v58  ;;  %v298_v32 = vld [vmem:[#allocation5 + $0x258] sm:$0xff] }
  0x4d   : > { %v223_v60 = vld [vmem:[#allocation5] sm:$0xff]  ;;  %528 = vmatpush.msra.mxu1 %v359_v57  ;;  %v224_v62 = vld [vmem:[#allocation5 + $0x8] sm:$0xff]  ;;  %598 = vmatpush.msra.mxu3 %v360_v59  ;;  %v426_v33 = vld [vmem:[#allocation5 + $0x658] sm:$0xff] }
  0x4e   : > { %v351_v61 = vld [vmem:[#allocation5 + $0x400] sm:$0xff]  ;;  %v352_v63 = vld [vmem:[#allocation5 + $0x408] sm:$0xff]  ;;  %494 = vmatpush.msra.mxu0 %v223_v60  ;;  %564 = vmatpush.msra.mxu2 %v224_v62  ;;  %v289_v34 = vld [vmem:[#allocation5 + $0x210] sm:$0xff] }
  0x4f   : > { %v2155_v0 = vld [vmem:[%s2144_s25] sm:$0xff]  ;;  %v2158_v1 = vld [vmem:[%s2144_s25 + $0x8] sm:$0xff]  ;;  %529 = vmatpush.msra.mxu1 %v351_v61  ;;  %599 = vmatpush.msra.mxu3 %v352_v63  ;;  %v417_v35 = vld [vmem:[#allocation5 + $0x610] sm:$0xff] }
  0x50   : > { %495 = vmatmul.f32.vlgmr.msra.gmra.mxu0 %v2155_v0  ;;  %530 = vmatmul.f32.vlgmr.msra.gmra.mxu1 %v2158_v1  ;;  %v2175_v28 = vld [vmem:[%s2144_s25 + $0x20] sm:$0xff]  ;;  %v2178_v29 = vld [vmem:[%s2144_s25 + $0x28] sm:$0xff]  ;;  %v290_v36 = vld [vmem:[#allocation5 + $0x218] sm:$0xff] }
  0x51   : > { %565 = vmatmul.f32.vlgmr.msra.gmra.mxu2 %v2155_v0  ;;  %600 = vmatmul.f32.vlgmr.msra.gmra.mxu3 %v2158_v1  ;;  %v418_v37 = vld [vmem:[#allocation5 + $0x618] sm:$0xff]  ;;  %v281_v38 = vld [vmem:[#allocation5 + $0x1d0] sm:$0xff]  ;;  %v2195_v56 = vld [vmem:[%s2144_s25 + $0x40] sm:$0xff] }
  0x52   : > { %619 = vmatpush.msrb.mxu0 %v345_v2  ;;  %654 = vmatpush.msrb.mxu1 %v473_v3  ;;  %v409_v39 = vld [vmem:[#allocation5 + $0x5d0] sm:$0xff]  ;;  %v282_v40 = vld [vmem:[#allocation5 + $0x1d8] sm:$0xff]  ;;  %v2198_v57 = vld [vmem:[%s2144_s25 + $0x48] sm:$0xff] }
  0x53   : > { %689 = vmatpush.msrb.mxu2 %v346_v4  ;;  %724 = vmatpush.msrb.mxu3 %v474_v5  ;;  %v410_v41 = vld [vmem:[#allocation5 + $0x5d8] sm:$0xff]  ;;  %v2185_v42 = vld [vmem:[%s2144_s25 + $0x30] sm:$0xff] }
  0x54   : > { %620 = vmatpush.msrb.mxu0 %v337_v6  ;;  %655 = vmatpush.msrb.mxu1 %v465_v7  ;;  %v2188_v43 = vld [vmem:[%s2144_s25 + $0x38] sm:$0xff]  ;;  %v273_v44 = vld [vmem:[#allocation5 + $0x190] sm:$0xff] }
  0x55   : > { %690 = vmatpush.msrb.mxu2 %v338_v8  ;;  %725 = vmatpush.msrb.mxu3 %v466_v9  ;;  %v401_v45 = vld [vmem:[#allocation5 + $0x590] sm:$0xff]  ;;  %v274_v46 = vld [vmem:[#allocation5 + $0x198] sm:$0xff] }
  0x56   : > { %621 = vmatpush.msrb.mxu0 %v329_v10  ;;  %656 = vmatpush.msrb.mxu1 %v457_v11  ;;  %v402_v47 = vld [vmem:[#allocation5 + $0x598] sm:$0xff]  ;;  %v265_v48 = vld [vmem:[#allocation5 + $0x150] sm:$0xff] }
  0x57   : > { %691 = vmatpush.msrb.mxu2 %v330_v12  ;;  %726 = vmatpush.msrb.mxu3 %v458_v13  ;;  %v393_v49 = vld [vmem:[#allocation5 + $0x550] sm:$0xff]  ;;  %v266_v50 = vld [vmem:[#allocation5 + $0x158] sm:$0xff] }
  0x58   : > { %498 = vmatmul.f32.gmra.mxu0 %v2165_v14  ;;  %533 = vmatmul.f32.gmra.mxu1 %v2168_v15  ;;  %v394_v51 = vld [vmem:[#allocation5 + $0x558] sm:$0xff]  ;;  %v257_v52 = vld [vmem:[#allocation5 + $0x110] sm:$0xff] }
  0x59   : > { %568 = vmatmul.f32.gmra.mxu2 %v2165_v14  ;;  %603 = vmatmul.f32.gmra.mxu3 %v2168_v15  ;;  %v385_v53 = vld [vmem:[#allocation5 + $0x510] sm:$0xff]  ;;  %v258_v54 = vld [vmem:[#allocation5 + $0x118] sm:$0xff] }
  0x5a   : > { %622 = vmatpush.msrb.mxu0 %v321_v16  ;;  %657 = vmatpush.msrb.mxu1 %v449_v17  ;;  %v386_v55 = vld [vmem:[#allocation5 + $0x518] sm:$0xff]  ;;  %v249_v58 = vld [vmem:[#allocation5 + $0xd0] sm:$0xff]  ;;  %v347_v16 = vld [vmem:[#allocation5 + $0x3e0] sm:$0xff] }
  0x5b   : > { %692 = vmatpush.msrb.mxu2 %v322_v18  ;;  %727 = vmatpush.msrb.mxu3 %v450_v19  ;;  %v377_v59 = vld [vmem:[#allocation5 + $0x4d0] sm:$0xff]  ;;  %v250_v60 = vld [vmem:[#allocation5 + $0xd8] sm:$0xff]  ;;  %v475_v17 = vld [vmem:[#allocation5 + $0x7e0] sm:$0xff] }
  0x5c   : > { %623 = vmatpush.msrb.mxu0 %v313_v20  ;;  %658 = vmatpush.msrb.mxu1 %v441_v21  ;;  %v378_v61 = vld [vmem:[#allocation5 + $0x4d8] sm:$0xff]  ;;  %v241_v62 = vld [vmem:[#allocation5 + $0x90] sm:$0xff]  ;;  %v348_v18 = vld [vmem:[#allocation5 + $0x3e8] sm:$0xff] }
  0x5d   : > { %693 = vmatpush.msrb.mxu2 %v314_v22  ;;  %728 = vmatpush.msrb.mxu3 %v442_v23  ;;  %v369_v63 = vld [vmem:[#allocation5 + $0x490] sm:$0xff]  ;;  %v242_v2 = vld [vmem:[#allocation5 + $0x98] sm:$0xff]  ;;  %v476_v19 = vld [vmem:[#allocation5 + $0x7e8] sm:$0xff] }
  0x5e   : > { %624 = vmatpush.msrb.mxu0 %v305_v24  ;;  %659 = vmatpush.msrb.mxu1 %v433_v25  ;;  %v370_v3 = vld [vmem:[#allocation5 + $0x498] sm:$0xff]  ;;  %v233_v4 = vld [vmem:[#allocation5 + $0x50] sm:$0xff]  ;;  %v339_v20 = vld [vmem:[#allocation5 + $0x3a0] sm:$0xff] }
  0x5f   : > { %694 = vmatpush.msrb.mxu2 %v306_v26  ;;  %729 = vmatpush.msrb.mxu3 %v434_v27  ;;  %v361_v5 = vld [vmem:[#allocation5 + $0x450] sm:$0xff]  ;;  %v234_v6 = vld [vmem:[#allocation5 + $0x58] sm:$0xff]  ;;  %v467_v21 = vld [vmem:[#allocation5 + $0x7a0] sm:$0xff] }
  0x60   : > { %501 = vmatmul.f32.gmra.mxu0 %v2175_v28  ;;  %536 = vmatmul.f32.gmra.mxu1 %v2178_v29  ;;  %v362_v7 = vld [vmem:[#allocation5 + $0x458] sm:$0xff]  ;;  %v2205_v8 = vld [vmem:[%s2144_s25 + $0x50] sm:$0xff]  ;;  %v340_v22 = vld [vmem:[#allocation5 + $0x3a8] sm:$0xff] }
  0x61   : > { %571 = vmatmul.f32.gmra.mxu2 %v2175_v28  ;;  %606 = vmatmul.f32.gmra.mxu3 %v2178_v29  ;;  %v2208_v9 = vld [vmem:[%s2144_s25 + $0x58] sm:$0xff]  ;;  %v225_v10 = vld [vmem:[#allocation5 + $0x10] sm:$0xff]  ;;  %v468_v23 = vld [vmem:[#allocation5 + $0x7a8] sm:$0xff]  ;;  %s1962_s25 = sshra.s32 %s1625_s11, 4  ;;  %s1963_s25 = int_to_ptr.hbm [resolvable:$true] %s1962_s25 }
  0x62   : > { %625 = vmatpush.msrb.mxu0 %v297_v30  ;;  %660 = vmatpush.msrb.mxu1 %v425_v31  ;;  %v353_v11 = vld [vmem:[#allocation5 + $0x410] sm:$0xff]  ;;  %v226_v12 = vld [vmem:[#allocation5 + $0x18] sm:$0xff]  ;;  %v331_v24 = vld [vmem:[#allocation5 + $0x360] sm:$0xff]  ;;  %s1964_s18 = scalar_lea.hbm %s1963_s25, 768  ;;  %p1969_p11 = scmp.lt.s32.totalorder %s1963_s25, %s2731_s3 }
  0x63   : > { %695 = vmatpush.msrb.mxu2 %v298_v32  ;;  %730 = vmatpush.msrb.mxu3 %v426_v33  ;;  %v354_v13 = vld [vmem:[#allocation5 + $0x418] sm:$0xff]  ;;  %v459_v25 = vld [vmem:[#allocation5 + $0x760] sm:$0xff]  ;;  %v332_v26 = vld [vmem:[#allocation5 + $0x368] sm:$0xff]  ;;  %p1965_p1 = scmp.ne.s32.totalorder %s1963_s25, %s1964_s18  ;;  %p1970_p9 = scmp.lt.s32.totalorder %s1968_s17, %s1964_s18 }
  0x64   : > { %626 = vmatpush.msrb.mxu0 %v289_v34  ;;  %661 = vmatpush.msrb.mxu1 %v417_v35  ;;  %v460_v27 = vld [vmem:[#allocation5 + $0x768] sm:$0xff]  ;;  %v323_v30 = vld [vmem:[#allocation5 + $0x320] sm:$0xff] }
  0x65   : > { %696 = vmatpush.msrb.mxu2 %v290_v36  ;;  %731 = vmatpush.msrb.mxu3 %v418_v37  ;;  %v451_v31 = vld [vmem:[#allocation5 + $0x720] sm:$0xff]  ;;  %v324_v32 = vld [vmem:[#allocation5 + $0x328] sm:$0xff]  ;;  %p1966_p4 = pnand %p1965_p1, %p2114_p7  ;;  %p1971_p2 = por %p1970_p9, %p1969_p11 }
  0x66   : > { %627 = vmatpush.msrb.mxu0 %v281_v38  ;;  %662 = vmatpush.msrb.mxu1 %v409_v39  ;;  %v452_v33 = vld [vmem:[#allocation5 + $0x728] sm:$0xff]  ;;  %v315_v34 = vld [vmem:[#allocation5 + $0x2e0] sm:$0xff] }
  0x67   : > { %697 = vmatpush.msrb.mxu2 %v282_v40  ;;  %732 = vmatpush.msrb.mxu3 %v410_v41  ;;  %v443_v35 = vld [vmem:[#allocation5 + $0x6e0] sm:$0xff]  ;;  %v316_v36 = vld [vmem:[#allocation5 + $0x2e8] sm:$0xff]  ;;  %p1967_p8 = pneg %p1966_p4 }
  0x68   : > { %504 = vmatmul.f32.gmra.mxu0 %v2185_v42  ;;  %539 = vmatmul.f32.gmra.mxu1 %v2188_v43  ;;  %v444_v37 = vld [vmem:[#allocation5 + $0x6e8] sm:$0xff]  ;;  %v307_v38 = vld [vmem:[#allocation5 + $0x2a0] sm:$0xff] }
  0x69   : > { %574 = vmatmul.f32.gmra.mxu2 %v2185_v42  ;;  %609 = vmatmul.f32.gmra.mxu3 %v2188_v43  ;;  %v435_v39 = vld [vmem:[#allocation5 + $0x6a0] sm:$0xff]  ;;  %v308_v40 = vld [vmem:[#allocation5 + $0x2a8] sm:$0xff]  ;;  %p1972_p10 = pnand %p1971_p2, %p1967_p8 }
  0x6a   : > { %628 = vmatpush.msrb.mxu0 %v273_v44  ;;  %663 = vmatpush.msrb.mxu1 %v401_v45  ;;  %v436_v41 = vld [vmem:[#allocation5 + $0x6a8] sm:$0xff]  ;;  %v299_v44 = vld [vmem:[#allocation5 + $0x260] sm:$0xff] }
  0x6b   : > { %698 = vmatpush.msrb.mxu2 %v274_v46  ;;  %733 = vmatpush.msrb.mxu3 %v402_v47  ;;  %v427_v45 = vld [vmem:[#allocation5 + $0x660] sm:$0xff]  ;;  %v300_v46 = vld [vmem:[#allocation5 + $0x268] sm:$0xff] }
  0x6c   : > { %629 = vmatpush.msrb.mxu0 %v265_v48  ;;  %664 = vmatpush.msrb.mxu1 %v393_v49  ;;  %v428_v47 = vld [vmem:[#allocation5 + $0x668] sm:$0xff]  ;;  %v291_v48 = vld [vmem:[#allocation5 + $0x220] sm:$0xff] }
  0x6d   : > { %699 = vmatpush.msrb.mxu2 %v266_v50  ;;  %734 = vmatpush.msrb.mxu3 %v394_v51  ;;  %v419_v49 = vld [vmem:[#allocation5 + $0x620] sm:$0xff]  ;;  %v292_v50 = vld [vmem:[#allocation5 + $0x228] sm:$0xff] }
  0x6e   : > { %630 = vmatpush.msrb.mxu0 %v257_v52  ;;  %665 = vmatpush.msrb.mxu1 %v385_v53  ;;  %v420_v51 = vld [vmem:[#allocation5 + $0x628] sm:$0xff]  ;;  %v283_v52 = vld [vmem:[#allocation5 + $0x1e0] sm:$0xff] }
  0x6f   : > { %700 = vmatpush.msrb.mxu2 %v258_v54  ;;  %735 = vmatpush.msrb.mxu3 %v386_v55  ;;  %v411_v53 = vld [vmem:[#allocation5 + $0x5e0] sm:$0xff]  ;;  %v284_v54 = vld [vmem:[#allocation5 + $0x1e8] sm:$0xff] }
  0x70   : > { %507 = vmatmul.f32.gmra.mxu0 %v2195_v56  ;;  %542 = vmatmul.f32.gmra.mxu1 %v2198_v57  ;;  %v412_v55 = vld [vmem:[#allocation5 + $0x5e8] sm:$0xff] }
  0x71   : > { %577 = vmatmul.f32.gmra.mxu2 %v2195_v56  ;;  %612 = vmatmul.f32.gmra.mxu3 %v2198_v57 }
  0x72   : > { %631 = vmatpush.msrb.mxu0 %v249_v58  ;;  %666 = vmatpush.msrb.mxu1 %v377_v59  ;;  %v275_v58 = vld [vmem:[#allocation5 + $0x1a0] sm:$0xff] }
  0x73   : > { %701 = vmatpush.msrb.mxu2 %v250_v60  ;;  %736 = vmatpush.msrb.mxu3 %v378_v61  ;;  %v403_v59 = vld [vmem:[#allocation5 + $0x5a0] sm:$0xff]  ;;  %v276_v60 = vld [vmem:[#allocation5 + $0x1a8] sm:$0xff] }
  0x74   : > { %632 = vmatpush.msrb.mxu0 %v241_v62  ;;  %667 = vmatpush.msrb.mxu1 %v369_v63  ;;  %v404_v61 = vld [vmem:[#allocation5 + $0x5a8] sm:$0xff]  ;;  %v267_v62 = vld [vmem:[#allocation5 + $0x160] sm:$0xff] }
  0x75   : > { %702 = vmatpush.msrb.mxu2 %v242_v2  ;;  %737 = vmatpush.msrb.mxu3 %v370_v3  ;;  %v395_v63 = vld [vmem:[#allocation5 + $0x560] sm:$0xff]  ;;  %v268_v2 = vld [vmem:[#allocation5 + $0x168] sm:$0xff] }
  0x76   : > { %633 = vmatpush.msrb.mxu0 %v233_v4  ;;  %668 = vmatpush.msrb.mxu1 %v361_v5  ;;  %v396_v3 = vld [vmem:[#allocation5 + $0x568] sm:$0xff]  ;;  %v259_v4 = vld [vmem:[#allocation5 + $0x120] sm:$0xff] }
  0x77   : > { %703 = vmatpush.msrb.mxu2 %v234_v6  ;;  %738 = vmatpush.msrb.mxu3 %v362_v7  ;;  %v387_v5 = vld [vmem:[#allocation5 + $0x520] sm:$0xff]  ;;  %v260_v6 = vld [vmem:[#allocation5 + $0x128] sm:$0xff] }
  0x78   : > { %510 = vmatmul.f32.gmra.mxu0 %v2205_v8  ;;  %545 = vmatmul.f32.gmra.mxu1 %v2208_v9  ;;  %v388_v7 = vld [vmem:[#allocation5 + $0x528] sm:$0xff] }
  0x79   : > { %580 = vmatmul.f32.gmra.mxu2 %v2205_v8  ;;  %615 = vmatmul.f32.gmra.mxu3 %v2208_v9 }
  0x7a   : > { %634 = vmatpush.msrb.mxu0 %v225_v10  ;;  %669 = vmatpush.msrb.mxu1 %v353_v11  ;;  %v251_v10 = vld [vmem:[#allocation5 + $0xe0] sm:$0xff] }
  0x7b   : > { %704 = vmatpush.msrb.mxu2 %v226_v12  ;;  %739 = vmatpush.msrb.mxu3 %v354_v13  ;;  %v379_v11 = vld [vmem:[#allocation5 + $0x4e0] sm:$0xff]  ;;  %v252_v12 = vld [vmem:[#allocation5 + $0xe8] sm:$0xff] }
  0x7c   : > { %759 = vmatpush.msra.mxu0 %v347_v16  ;;  %794 = vmatpush.msra.mxu1 %v475_v17  ;;  %v380_v13 = vld [vmem:[#allocation5 + $0x4e8] sm:$0xff]  ;;  %v243_v16 = vld [vmem:[#allocation5 + $0xa0] sm:$0xff] }
  0x7d   : > { %829 = vmatpush.msra.mxu2 %v348_v18  ;;  %864 = vmatpush.msra.mxu3 %v476_v19  ;;  %v371_v17 = vld [vmem:[#allocation5 + $0x4a0] sm:$0xff]  ;;  %v244_v18 = vld [vmem:[#allocation5 + $0xa8] sm:$0xff] }
  0x7e   : > { %760 = vmatpush.msra.mxu0 %v339_v20  ;;  %795 = vmatpush.msra.mxu1 %v467_v21  ;;  %v372_v19 = vld [vmem:[#allocation5 + $0x4a8] sm:$0xff]  ;;  %v235_v20 = vld [vmem:[#allocation5 + $0x60] sm:$0xff] }
  0x7f   : > { %830 = vmatpush.msra.mxu2 %v340_v22  ;;  %865 = vmatpush.msra.mxu3 %v468_v23  ;;  %v363_v21 = vld [vmem:[#allocation5 + $0x460] sm:$0xff]  ;;  %v236_v22 = vld [vmem:[#allocation5 + $0x68] sm:$0xff] }
  0x80   : > { %635 = vmatmul.f32.vlgmr.msrb.gmra.mxu0 %v2155_v0  ;;  %670 = vmatmul.f32.vlgmr.msrb.gmra.mxu1 %v2158_v1  ;;  %v364_v23 = vld [vmem:[#allocation5 + $0x468] sm:$0xff] }
  0x81   : > { %705 = vmatmul.f32.vlgmr.msrb.gmra.mxu2 %v2155_v0  ;;  %740 = vmatmul.f32.vlgmr.msrb.gmra.mxu3 %v2158_v1 }
  0x82   : > { %761 = vmatpush.msra.mxu0 %v331_v24  ;;  %796 = vmatpush.msra.mxu1 %v459_v25  ;;  %v227_v24 = vld [vmem:[#allocation5 + $0x20] sm:$0xff] }
  0x83   : > { %831 = vmatpush.msra.mxu2 %v332_v26  ;;  %866 = vmatpush.msra.mxu3 %v460_v27  ;;  %v355_v25 = vld [vmem:[#allocation5 + $0x420] sm:$0xff]  ;;  %v228_v26 = vld [vmem:[#allocation5 + $0x28] sm:$0xff] }
  0x84   : > { %762 = vmatpush.msra.mxu0 %v323_v30  ;;  %797 = vmatpush.msra.mxu1 %v451_v31  ;;  %v356_v27 = vld [vmem:[#allocation5 + $0x428] sm:$0xff]  ;;  %v349_v30 = vld [vmem:[#allocation5 + $0x3f0] sm:$0xff] }
  0x85   : > { %832 = vmatpush.msra.mxu2 %v324_v32  ;;  %867 = vmatpush.msra.mxu3 %v452_v33  ;;  %v477_v31 = vld [vmem:[#allocation5 + $0x7f0] sm:$0xff]  ;;  %v350_v32 = vld [vmem:[#allocation5 + $0x3f8] sm:$0xff] }
  0x86   : > { %763 = vmatpush.msra.mxu0 %v315_v34  ;;  %798 = vmatpush.msra.mxu1 %v443_v35  ;;  %v478_v33 = vld [vmem:[#allocation5 + $0x7f8] sm:$0xff]  ;;  %v341_v34 = vld [vmem:[#allocation5 + $0x3b0] sm:$0xff] }
  0x87   : > { %833 = vmatpush.msra.mxu2 %v316_v36  ;;  %868 = vmatpush.msra.mxu3 %v444_v37  ;;  %v469_v35 = vld [vmem:[#allocation5 + $0x7b0] sm:$0xff]  ;;  %v342_v36 = vld [vmem:[#allocation5 + $0x3b8] sm:$0xff] }
  0x88   : > { %638 = vmatmul.f32.gmra.mxu0 %v2165_v14  ;;  %673 = vmatmul.f32.gmra.mxu1 %v2168_v15  ;;  %v470_v37 = vld [vmem:[#allocation5 + $0x7b8] sm:$0xff] }
  0x89   : > { %708 = vmatmul.f32.gmra.mxu2 %v2165_v14  ;;  %743 = vmatmul.f32.gmra.mxu3 %v2168_v15 }
  0x8a   : > { %764 = vmatpush.msra.mxu0 %v307_v38  ;;  %799 = vmatpush.msra.mxu1 %v435_v39  ;;  %v333_v38 = vld [vmem:[#allocation5 + $0x370] sm:$0xff] }
  0x8b   : > { %834 = vmatpush.msra.mxu2 %v308_v40  ;;  %869 = vmatpush.msra.mxu3 %v436_v41  ;;  %v461_v39 = vld [vmem:[#allocation5 + $0x770] sm:$0xff]  ;;  %v334_v40 = vld [vmem:[#allocation5 + $0x378] sm:$0xff] }
  0x8c   : > { %765 = vmatpush.msra.mxu0 %v299_v44  ;;  %800 = vmatpush.msra.mxu1 %v427_v45  ;;  %v462_v41 = vld [vmem:[#allocation5 + $0x778] sm:$0xff]  ;;  %v325_v44 = vld [vmem:[#allocation5 + $0x330] sm:$0xff] }
  0x8d   : > { %835 = vmatpush.msra.mxu2 %v300_v46  ;;  %870 = vmatpush.msra.mxu3 %v428_v47  ;;  %v453_v45 = vld [vmem:[#allocation5 + $0x730] sm:$0xff]  ;;  %v326_v46 = vld [vmem:[#allocation5 + $0x338] sm:$0xff] }
  0x8e   : > { %766 = vmatpush.msra.mxu0 %v291_v48  ;;  %801 = vmatpush.msra.mxu1 %v419_v49  ;;  %v454_v47 = vld [vmem:[#allocation5 + $0x738] sm:$0xff]  ;;  %v317_v48 = vld [vmem:[#allocation5 + $0x2f0] sm:$0xff] }
  0x8f   : > { %836 = vmatpush.msra.mxu2 %v292_v50  ;;  %871 = vmatpush.msra.mxu3 %v420_v51  ;;  %v445_v49 = vld [vmem:[#allocation5 + $0x6f0] sm:$0xff]  ;;  %v318_v50 = vld [vmem:[#allocation5 + $0x2f8] sm:$0xff] }
  0x90   : > { %641 = vmatmul.f32.gmra.mxu0 %v2175_v28  ;;  %676 = vmatmul.f32.gmra.mxu1 %v2178_v29  ;;  %v446_v51 = vld [vmem:[#allocation5 + $0x6f8] sm:$0xff] }
  0x91   : > { %711 = vmatmul.f32.gmra.mxu2 %v2175_v28  ;;  %746 = vmatmul.f32.gmra.mxu3 %v2178_v29 }
  0x92   : > { %767 = vmatpush.msra.mxu0 %v283_v52  ;;  %802 = vmatpush.msra.mxu1 %v411_v53  ;;  %v309_v52 = vld [vmem:[#allocation5 + $0x2b0] sm:$0xff] }
  0x93   : > { %837 = vmatpush.msra.mxu2 %v284_v54  ;;  %872 = vmatpush.msra.mxu3 %v412_v55  ;;  %v437_v53 = vld [vmem:[#allocation5 + $0x6b0] sm:$0xff]  ;;  %v310_v54 = vld [vmem:[#allocation5 + $0x2b8] sm:$0xff] }
  0x94   : > { %768 = vmatpush.msra.mxu0 %v275_v58  ;;  %803 = vmatpush.msra.mxu1 %v403_v59  ;;  %v438_v55 = vld [vmem:[#allocation5 + $0x6b8] sm:$0xff]  ;;  %v301_v58 = vld [vmem:[#allocation5 + $0x270] sm:$0xff] }
  0x95   : > { %838 = vmatpush.msra.mxu2 %v276_v60  ;;  %873 = vmatpush.msra.mxu3 %v404_v61  ;;  %v429_v59 = vld [vmem:[#allocation5 + $0x670] sm:$0xff]  ;;  %v302_v60 = vld [vmem:[#allocation5 + $0x278] sm:$0xff] }
  0x96   : > { %769 = vmatpush.msra.mxu0 %v267_v62  ;;  %804 = vmatpush.msra.mxu1 %v395_v63  ;;  %v430_v61 = vld [vmem:[#allocation5 + $0x678] sm:$0xff]  ;;  %v293_v62 = vld [vmem:[#allocation5 + $0x230] sm:$0xff] }
  0x97   : > { %839 = vmatpush.msra.mxu2 %v268_v2  ;;  %874 = vmatpush.msra.mxu3 %v396_v3  ;;  %v421_v63 = vld [vmem:[#allocation5 + $0x630] sm:$0xff]  ;;  %v294_v2 = vld [vmem:[#allocation5 + $0x238] sm:$0xff] }
  0x98   : > { %644 = vmatmul.f32.gmra.mxu0 %v2185_v42  ;;  %679 = vmatmul.f32.gmra.mxu1 %v2188_v43  ;;  %v422_v3 = vld [vmem:[#allocation5 + $0x638] sm:$0xff] }
  0x99   : > { %714 = vmatmul.f32.gmra.mxu2 %v2185_v42  ;;  %749 = vmatmul.f32.gmra.mxu3 %v2188_v43 }
  0x9a   : > { %770 = vmatpush.msra.mxu0 %v259_v4  ;;  %805 = vmatpush.msra.mxu1 %v387_v5  ;;  %v285_v4 = vld [vmem:[#allocation5 + $0x1f0] sm:$0xff] }
  0x9b   : > { %840 = vmatpush.msra.mxu2 %v260_v6  ;;  %875 = vmatpush.msra.mxu3 %v388_v7  ;;  %v413_v5 = vld [vmem:[#allocation5 + $0x5f0] sm:$0xff]  ;;  %v286_v6 = vld [vmem:[#allocation5 + $0x1f8] sm:$0xff] }
  0x9c   : > { %771 = vmatpush.msra.mxu0 %v251_v10  ;;  %806 = vmatpush.msra.mxu1 %v379_v11  ;;  %v414_v7 = vld [vmem:[#allocation5 + $0x5f8] sm:$0xff]  ;;  %v277_v10 = vld [vmem:[#allocation5 + $0x1b0] sm:$0xff] }
  0x9d   : > { %841 = vmatpush.msra.mxu2 %v252_v12  ;;  %876 = vmatpush.msra.mxu3 %v380_v13  ;;  %v405_v11 = vld [vmem:[#allocation5 + $0x5b0] sm:$0xff]  ;;  %v278_v12 = vld [vmem:[#allocation5 + $0x1b8] sm:$0xff] }
  0x9e   : > { %772 = vmatpush.msra.mxu0 %v243_v16  ;;  %807 = vmatpush.msra.mxu1 %v371_v17  ;;  %v406_v13 = vld [vmem:[#allocation5 + $0x5b8] sm:$0xff]  ;;  %v269_v16 = vld [vmem:[#allocation5 + $0x170] sm:$0xff] }
  0x9f   : > { %842 = vmatpush.msra.mxu2 %v244_v18  ;;  %877 = vmatpush.msra.mxu3 %v372_v19  ;;  %v397_v17 = vld [vmem:[#allocation5 + $0x570] sm:$0xff]  ;;  %v270_v18 = vld [vmem:[#allocation5 + $0x178] sm:$0xff] }
  0xa0   : > { %647 = vmatmul.f32.gmra.mxu0 %v2195_v56  ;;  %682 = vmatmul.f32.gmra.mxu1 %v2198_v57  ;;  %v398_v19 = vld [vmem:[#allocation5 + $0x578] sm:$0xff] }
  0xa1   : > { %717 = vmatmul.f32.gmra.mxu2 %v2195_v56  ;;  %752 = vmatmul.f32.gmra.mxu3 %v2198_v57 }
  0xa2   : > { %773 = vmatpush.msra.mxu0 %v235_v20  ;;  %808 = vmatpush.msra.mxu1 %v363_v21  ;;  %v261_v20 = vld [vmem:[#allocation5 + $0x130] sm:$0xff] }
  0xa3   : > { %843 = vmatpush.msra.mxu2 %v236_v22  ;;  %878 = vmatpush.msra.mxu3 %v364_v23  ;;  %v389_v21 = vld [vmem:[#allocation5 + $0x530] sm:$0xff]  ;;  %v262_v22 = vld [vmem:[#allocation5 + $0x138] sm:$0xff] }
  0xa4   : > { %774 = vmatpush.msra.mxu0 %v227_v24  ;;  %809 = vmatpush.msra.mxu1 %v355_v25  ;;  %v390_v23 = vld [vmem:[#allocation5 + $0x538] sm:$0xff]  ;;  %v253_v24 = vld [vmem:[#allocation5 + $0xf0] sm:$0xff] }
  0xa5   : > { %844 = vmatpush.msra.mxu2 %v228_v26  ;;  %879 = vmatpush.msra.mxu3 %v356_v27  ;;  %v381_v25 = vld [vmem:[#allocation5 + $0x4f0] sm:$0xff]  ;;  %v254_v26 = vld [vmem:[#allocation5 + $0xf8] sm:$0xff] }
  0xa6   : > { %899 = vmatpush.msrb.mxu0 %v349_v30  ;;  %934 = vmatpush.msrb.mxu1 %v477_v31  ;;  %v382_v27 = vld [vmem:[#allocation5 + $0x4f8] sm:$0xff]  ;;  %v245_v30 = vld [vmem:[#allocation5 + $0xb0] sm:$0xff] }
  0xa7   : > { %969 = vmatpush.msrb.mxu2 %v350_v32  ;;  %1004 = vmatpush.msrb.mxu3 %v478_v33  ;;  %v373_v31 = vld [vmem:[#allocation5 + $0x4b0] sm:$0xff]  ;;  %v246_v32 = vld [vmem:[#allocation5 + $0xb8] sm:$0xff] }
  0xa8   : > { %650 = vmatmul.f32.gmra.mxu0 %v2205_v8  ;;  %685 = vmatmul.f32.gmra.mxu1 %v2208_v9  ;;  %v374_v33 = vld [vmem:[#allocation5 + $0x4b8] sm:$0xff] }
  0xa9   : > { %720 = vmatmul.f32.gmra.mxu2 %v2205_v8  ;;  %755 = vmatmul.f32.gmra.mxu3 %v2208_v9 }
  0xaa   : > { %900 = vmatpush.msrb.mxu0 %v341_v34  ;;  %935 = vmatpush.msrb.mxu1 %v469_v35  ;;  %v237_v34 = vld [vmem:[#allocation5 + $0x70] sm:$0xff] }
  0xab   : > { %970 = vmatpush.msrb.mxu2 %v342_v36  ;;  %1005 = vmatpush.msrb.mxu3 %v470_v37  ;;  %v365_v35 = vld [vmem:[#allocation5 + $0x470] sm:$0xff]  ;;  %v238_v36 = vld [vmem:[#allocation5 + $0x78] sm:$0xff] }
  0xac   : > { %901 = vmatpush.msrb.mxu0 %v333_v38  ;;  %936 = vmatpush.msrb.mxu1 %v461_v39  ;;  %v366_v37 = vld [vmem:[#allocation5 + $0x478] sm:$0xff]  ;;  %v229_v38 = vld [vmem:[#allocation5 + $0x30] sm:$0xff] }
  0xad   : > { %971 = vmatpush.msrb.mxu2 %v334_v40  ;;  %1006 = vmatpush.msrb.mxu3 %v462_v41  ;;  %v357_v39 = vld [vmem:[#allocation5 + $0x430] sm:$0xff]  ;;  %v230_v40 = vld [vmem:[#allocation5 + $0x38] sm:$0xff] }
  0xae   : > { %902 = vmatpush.msrb.mxu0 %v325_v44  ;;  %937 = vmatpush.msrb.mxu1 %v453_v45  ;;  %v358_v41 = vld [vmem:[#allocation5 + $0x438] sm:$0xff] }
  0xaf   : > { %972 = vmatpush.msrb.mxu2 %v326_v46  ;;  %1007 = vmatpush.msrb.mxu3 %v454_v47 }
  0xb0   : > { %775 = vmatmul.f32.vlgmr.msra.gmra.mxu0 %v2155_v0  ;;  %810 = vmatmul.f32.vlgmr.msra.gmra.mxu1 %v2158_v1 }
  0xb1   : > { %845 = vmatmul.f32.vlgmr.msra.gmra.mxu2 %v2155_v0  ;;  %880 = vmatmul.f32.vlgmr.msra.gmra.mxu3 %v2158_v1 }
  0xb2   : > { %903 = vmatpush.msrb.mxu0 %v317_v48  ;;  %938 = vmatpush.msrb.mxu1 %v445_v49 }
  0xb3   : > { %973 = vmatpush.msrb.mxu2 %v318_v50  ;;  %1008 = vmatpush.msrb.mxu3 %v446_v51 }
  0xb4   : > { %904 = vmatpush.msrb.mxu0 %v309_v52  ;;  %939 = vmatpush.msrb.mxu1 %v437_v53 }
  0xb5   : > { %974 = vmatpush.msrb.mxu2 %v310_v54  ;;  %1009 = vmatpush.msrb.mxu3 %v438_v55 }
  0xb6   : > { %905 = vmatpush.msrb.mxu0 %v301_v58  ;;  %940 = vmatpush.msrb.mxu1 %v429_v59 }
  0xb7   : > { %975 = vmatpush.msrb.mxu2 %v302_v60  ;;  %1010 = vmatpush.msrb.mxu3 %v430_v61 }
  0xb8   : > { %778 = vmatmul.f32.gmra.mxu0 %v2165_v14  ;;  %813 = vmatmul.f32.gmra.mxu1 %v2168_v15 }
  0xb9   : > { %848 = vmatmul.f32.gmra.mxu2 %v2165_v14  ;;  %883 = vmatmul.f32.gmra.mxu3 %v2168_v15 }
  0xba   : > { %906 = vmatpush.msrb.mxu0 %v293_v62  ;;  %941 = vmatpush.msrb.mxu1 %v421_v63 }
  0xbb   : > { %976 = vmatpush.msrb.mxu2 %v294_v2  ;;  %1011 = vmatpush.msrb.mxu3 %v422_v3 }
  0xbc   : > { %907 = vmatpush.msrb.mxu0 %v285_v4  ;;  %942 = vmatpush.msrb.mxu1 %v413_v5 }
  0xbd   : > { %977 = vmatpush.msrb.mxu2 %v286_v6  ;;  %1012 = vmatpush.msrb.mxu3 %v414_v7 }
  0xbe   : > { %908 = vmatpush.msrb.mxu0 %v277_v10  ;;  %943 = vmatpush.msrb.mxu1 %v405_v11 }
  0xbf   : > { %978 = vmatpush.msrb.mxu2 %v278_v12  ;;  %1013 = vmatpush.msrb.mxu3 %v406_v13 }
  0xc0   : > { %781 = vmatmul.f32.gmra.mxu0 %v2175_v28  ;;  %816 = vmatmul.f32.gmra.mxu1 %v2178_v29 }
  0xc1   : > { %851 = vmatmul.f32.gmra.mxu2 %v2175_v28  ;;  %886 = vmatmul.f32.gmra.mxu3 %v2178_v29 }
  0xc2   : > { %909 = vmatpush.msrb.mxu0 %v269_v16  ;;  %944 = vmatpush.msrb.mxu1 %v397_v17 }
  0xc3   : > { %979 = vmatpush.msrb.mxu2 %v270_v18  ;;  %1014 = vmatpush.msrb.mxu3 %v398_v19 }
  0xc4   : > { %910 = vmatpush.msrb.mxu0 %v261_v20  ;;  %945 = vmatpush.msrb.mxu1 %v389_v21 }
  0xc5   : > { %980 = vmatpush.msrb.mxu2 %v262_v22  ;;  %1015 = vmatpush.msrb.mxu3 %v390_v23 }
  0xc6   : > { %911 = vmatpush.msrb.mxu0 %v253_v24  ;;  %946 = vmatpush.msrb.mxu1 %v381_v25 }
  0xc7   : > { %981 = vmatpush.msrb.mxu2 %v254_v26  ;;  %1016 = vmatpush.msrb.mxu3 %v382_v27 }
  0xc8   : > { %784 = vmatmul.f32.gmra.mxu0 %v2185_v42  ;;  %819 = vmatmul.f32.gmra.mxu1 %v2188_v43 }
  0xc9   : > { %854 = vmatmul.f32.gmra.mxu2 %v2185_v42  ;;  %889 = vmatmul.f32.gmra.mxu3 %v2188_v43 }
  0xca   : > { %912 = vmatpush.msrb.mxu0 %v245_v30  ;;  %947 = vmatpush.msrb.mxu1 %v373_v31  ;;  %v2312_v30 = vld [vmem:[%s2730_s2] sm:$0xff] }
  0xcb   : > { %982 = vmatpush.msrb.mxu2 %v246_v32  ;;  %1017 = vmatpush.msrb.mxu3 %v374_v33  ;;  %v2321_v33 = vld [vmem:[%s2730_s2 + $0x8] sm:$0xff] }
  0xcc   : > { %913 = vmatpush.msrb.mxu0 %v237_v34  ;;  %948 = vmatpush.msrb.mxu1 %v365_v35 }
  0xcd   : > { %v2254_v44 = vpop.f32.mrf.mxu0  ;;  %v2256_v45 = vpop.f32.mrf.mxu1  ;;  %983 = vmatpush.msrb.mxu2 %v238_v36  ;;  %1018 = vmatpush.msrb.mxu3 %v366_v37 }
  0xce   : > { %914 = vmatpush.msrb.mxu0 %v229_v38  ;;  %949 = vmatpush.msrb.mxu1 %v357_v39 }
  0xcf   : > { %984 = vmatpush.msrb.mxu2 %v230_v40  ;;  %1019 = vmatpush.msrb.mxu3 %v358_v41  ;;  %v2330_v41 = vld [vmem:[%s2730_s2 + $0x10] sm:$0xff] }
  0xd0   : > { %787 = vmatmul.f32.gmra.mxu0 %v2195_v56  ;;  %822 = vmatmul.f32.gmra.mxu1 %v2198_v57 }
  0xd1   : > { %857 = vmatmul.f32.gmra.mxu2 %v2195_v56  ;;  %892 = vmatmul.f32.gmra.mxu3 %v2198_v57 }
  0xd4   : > { %v2262_v46 = vpop.f32.mrf.mxu2  ;;  %v2264_v47 = vpop.f32.mrf.mxu3 }
  0xd5   : > { %v499_v48 = vpop.f32.mrf.mxu0  ;;  %v534_v49 = vpop.f32.mrf.mxu1 }
  0xd6   : > { %v535_v11 = vadd.f32 %v534_v49, %v499_v48 }
  0xd8   : > { %790 = vmatmul.f32.gmra.mxu0 %v2205_v8  ;;  %825 = vmatmul.f32.gmra.mxu1 %v2208_v9 }
  0xd9   : > { %860 = vmatmul.f32.gmra.mxu2 %v2205_v8  ;;  %895 = vmatmul.f32.gmra.mxu3 %v2208_v9 }
  0xdc   : > { %v2270_v50 = vpop.f32.mrf.mxu2  ;;  %v604_v51 = vpop.f32.mrf.mxu3 }
  0xdd   : > { %v502_v52 = vpop.f32.mrf.mxu0  ;;  %v537_v53 = vpop.f32.mrf.mxu1  ;;  %v605_v20 = vadd.f32 %v604_v51, %v2270_v50 }
  0xde   : > { %v538_v10 = vadd.f32 %v537_v53, %v502_v52 }
  0xe0   : > { %915 = vmatmul.f32.vlgmr.msrb.gmra.mxu0 %v2155_v0  ;;  %950 = vmatmul.f32.vlgmr.msrb.gmra.mxu1 %v2158_v1 }
  0xe1   : > { %985 = vmatmul.f32.vlgmr.msrb.gmra.mxu2 %v2155_v0  ;;  %1020 = vmatmul.f32.vlgmr.msrb.gmra.mxu3 %v2158_v1 }
  0xe4   : > { %v572_v54 = vpop.f32.mrf.mxu2  ;;  %v607_v55 = vpop.f32.mrf.mxu3 }
  0xe5   : > { %v505_v58 = vpop.f32.mrf.mxu0  ;;  %v540_v59 = vpop.f32.mrf.mxu1  ;;  %v608_v17 = vadd.f32 %v607_v55, %v572_v54  ;;  %v2347_v55 = vld [vmem:[%s2730_s2 + $0x18] sm:$0xff] }
  0xe8   : > { %918 = vmatmul.f32.gmra.mxu0 %v2165_v14  ;;  %953 = vmatmul.f32.gmra.mxu1 %v2168_v15 }
  0xe9   : > { %988 = vmatmul.f32.gmra.mxu2 %v2165_v14  ;;  %1023 = vmatmul.f32.gmra.mxu3 %v2168_v15  ;;  %v541_v15 = vadd.f32 %v540_v59, %v505_v58 }
  0xec   : > { %v575_v60 = vpop.f32.mrf.mxu2  ;;  %v610_v61 = vpop.f32.mrf.mxu3 }
  0xed   : > { %v508_v62 = vpop.f32.mrf.mxu0  ;;  %v543_v63 = vpop.f32.mrf.mxu1  ;;  %v611_v12 = vadd.f32 %v610_v61, %v575_v60 }
  0xee   : > { %v544_v14 = vadd.f32 %v543_v63, %v508_v62 }
  0xf0   : > { %921 = vmatmul.f32.gmra.mxu0 %v2175_v28  ;;  %956 = vmatmul.f32.gmra.mxu1 %v2178_v29 }
  0xf1   : > { %991 = vmatmul.f32.gmra.mxu2 %v2175_v28  ;;  %1026 = vmatmul.f32.gmra.mxu3 %v2178_v29 }
  0xf4   : > { %v578_v0 = vpop.f32.mrf.mxu2  ;;  %v613_v1 = vpop.f32.mrf.mxu3 }
  0xf5   : > { %v511_v2 = vpop.f32.mrf.mxu0  ;;  %v546_v3 = vpop.f32.mrf.mxu1 }
  0xf6   : > { %v547_v4 = vadd.f32 %v546_v3, %v511_v2 }
  0xf8   : > { %924 = vmatmul.f32.gmra.mxu0 %v2185_v42  ;;  %959 = vmatmul.f32.gmra.mxu1 %v2188_v43 }
  0xf9   : > { %994 = vmatmul.f32.gmra.mxu2 %v2185_v42  ;;  %1029 = vmatmul.f32.gmra.mxu3 %v2188_v43  ;;  %v614_v42 = vadd.f32 %v613_v1, %v578_v0  ;;  %v532_v43 = vadd.f32 %v2256_v45, %v2254_v44  ;;  %v2366_v0 = vld [vmem:[%s2730_s2 + $0x20] sm:$0xff] }
  0xfa   : > { %1098 = vmatpush.msra.mxu0 %v547_v4 }
  0xfc   : > { %1099 = vmatpush.msra.mxu0 %v544_v14  ;;  %v581_v28 = vpop.f32.mrf.mxu2  ;;  %v616_v5 = vpop.f32.mrf.mxu3  ;;  %v2383_v14 = vld [vmem:[%s2730_s2 + $0x28] sm:$0xff] }
  0xfd   : > { %v617_v29 = vadd.f32 %v616_v5, %v581_v28  ;;  %v2288_v6 = vpop.f32.mrf.mxu0  ;;  %v2290_v7 = vpop.f32.mrf.mxu1 }
  0xfe   : > { %1100 = vmatpush.msra.mxu0 %v541_v15  ;;  %v672_v52 = vadd.f32 %v2290_v7, %v2288_v6  ;;  %v2396_v6 = vld [vmem:[%s2730_s2 + $0x30] sm:$0xff] }
  0xff   : > { %1151 = vmatpush.msra.mxu1 %v617_v29 }
 0x100   : > { %1101 = vmatpush.msra.mxu0 %v538_v10  ;;  %962 = vmatmul.f32.gmra.mxu1 %v2198_v57 }
 0x101   : > { %927 = vmatmul.f32.gmra.mxu0 %v2195_v56  ;;  %997 = vmatmul.f32.gmra.mxu2 %v2195_v56  ;;  %v602_v56 = vadd.f32 %v2264_v47, %v2262_v46 }
 0x102   : > { %1032 = vmatmul.f32.gmra.mxu3 %v2198_v57  ;;  %1102 = vmatpush.msra.mxu0 %v535_v11 }
 0x103   : > { %1152 = vmatpush.msra.mxu1 %v614_v42 }
 0x104   : > { %1103 = vmatpush.msra.mxu0 %v532_v43  ;;  %v2298_v13 = vpop.f32.mrf.mxu2  ;;  %v2300_v16 = vpop.f32.mrf.mxu3  ;;  %v2409_v43 = vld [vmem:[%s2730_s2 + $0x38] sm:$0xff] }
 0x105   : > { %1153 = vmatpush.msra.mxu1 %v611_v12  ;;  %v639_v18 = vpop.f32.mrf.mxu0  ;;  %v674_v19 = vpop.f32.mrf.mxu1  ;;  %v742_v63 = vadd.f32 %v2300_v16, %v2298_v13 }
 0x106   : > { %v675_v50 = vadd.f32 %v674_v19, %v639_v18 }
 0x107   : > { %1154 = vmatpush.msra.mxu1 %v608_v17 }
 0x108   : > { %965 = vmatmul.f32.gmra.mxu1 %v2208_v9 }
 0x109   : > { %1155 = vmatpush.msra.mxu1 %v605_v20  ;;  %930 = vmatmul.f32.gmra.mxu0 %v2205_v8 }
 0x10a   : > { %1000 = vmatmul.f32.gmra.mxu2 %v2205_v8  ;;  %1035 = vmatmul.f32.gmra.mxu3 %v2208_v9 }
 0x10b   : > { %1156 = vmatpush.msra.mxu1 %v602_v56 }
 0x10c   : > { %v709_v57 = vpop.f32.mrf.mxu2  ;;  %v744_v21 = vpop.f32.mrf.mxu3 }
 0x10d   : > { %v642_v22 = vpop.f32.mrf.mxu0  ;;  %v677_v23 = vpop.f32.mrf.mxu1  ;;  %v745_v60 = vadd.f32 %v744_v21, %v709_v57 }
 0x10e   : > { %v678_v44 = vadd.f32 %v677_v23, %v642_v22  ;;  %v2422_v22 = vld [vmem:[%s2730_s2 + $0x40] sm:$0xff] }
 0x110   : > { %1728 = vmatmul.msk.f32.vlgmr.msra.gmra.mxu1 %vm1051_vm0, %v2312_v30 }
 0x111   : > { %1716 = vmatmul.msk.f32.vlgmr.msra.gmra.mxu0 %vm1051_vm0, %v2312_v30 }
 0x114   : > { %v712_v24 = vpop.f32.mrf.mxu2  ;;  %v747_v25 = vpop.f32.mrf.mxu3 }
 0x115   : > { %v645_v26 = vpop.f32.mrf.mxu0  ;;  %v680_v27 = vpop.f32.mrf.mxu1  ;;  %v748_v54 = vadd.f32 %v747_v25, %v712_v24 }
 0x116   : > { %v681_v40 = vadd.f32 %v680_v27, %v645_v26 }
 0x118   : > { %1729 = vmatmul.msk.f32.gmra.mxu1 %vm1051_vm0, %v2321_v33 }
 0x119   : > { %1717 = vmatmul.msk.f32.gmra.mxu0 %vm1051_vm0, %v2321_v33 }
 0x11c   : > { %v715_v31 = vpop.f32.mrf.mxu2  ;;  %v750_v32 = vpop.f32.mrf.mxu3 }
 0x11d   : > { %v648_v8 = vpop.f32.mrf.mxu0  ;;  %v683_v9 = vpop.f32.mrf.mxu1  ;;  %v751_v53 = vadd.f32 %v750_v32, %v715_v31 }
 0x11e   : > { %v684_v39 = vadd.f32 %v683_v9, %v648_v8 }
 0x120   : > { %1730 = vmatmul.msk.f32.gmra.mxu1 %vm1051_vm0, %v2330_v41 }
 0x121   : > { %1718 = vmatmul.msk.f32.gmra.mxu0 %vm1051_vm0, %v2330_v41 }
 0x124   : > { %v718_v34 = vpop.f32.mrf.mxu2  ;;  %v753_v35 = vpop.f32.mrf.mxu3 }
 0x125   : > { %v651_v36 = vpop.f32.mrf.mxu0  ;;  %v686_v37 = vpop.f32.mrf.mxu1  ;;  %v754_v51 = vadd.f32 %v753_v35, %v718_v34  ;;  %v2445_v35 = vld [vmem:[%s2730_s2 + $0x48] sm:$0xff] }
 0x126   : > { %v687_v38 = vadd.f32 %v686_v37, %v651_v36 }
 0x128   : > { %1204 = vmatpush.msra.mxu2 %v687_v38  ;;  %1731 = vmatmul.msk.f32.gmra.mxu1 %vm1051_vm0, %v2347_v55 }
 0x129   : > { %1719 = vmatmul.msk.f32.gmra.mxu0 %vm1051_vm0, %v2347_v55 }
 0x12a   : > { %1205 = vmatpush.msra.mxu2 %v684_v39 }
 0x12c   : > { %v721_v45 = vpop.f32.mrf.mxu2  ;;  %v756_v46 = vpop.f32.mrf.mxu3  ;;  %1206 = vmatpush.msra.mxu2 %v681_v40 }
 0x12d   : > { %v757_v47 = vadd.f32 %v756_v46, %v721_v45  ;;  %v2334_v48 = vpop.f32.mrf.mxu0  ;;  %v2336_v49 = vpop.f32.mrf.mxu1  ;;  %v2462_v45 = vld [vmem:[%s2730_s2 + $0x50] sm:$0xff] }
 0x12e   : > { %1207 = vmatpush.msra.mxu2 %v678_v44  ;;  %v812_v31 = vadd.f32 %v2336_v49, %v2334_v48 }
 0x12f   : > { %1257 = vmatpush.msra.mxu3 %v757_v47 }
 0x130   : > { %1208 = vmatpush.msra.mxu2 %v675_v50  ;;  %1732 = vmatmul.msk.f32.gmra.mxu1 %vm1051_vm0, %v2366_v0  ;;  %v2475_v50 = vld [vmem:[%s2730_s2 + $0x58] sm:$0xff] }
 0x131   : > { %1258 = vmatpush.msra.mxu3 %v754_v51  ;;  %1720 = vmatmul.msk.f32.gmra.mxu0 %vm1051_vm0, %v2366_v0 }
 0x132   : > { %1209 = vmatpush.msra.mxu2 %v672_v52 }
 0x133   : > { %1259 = vmatpush.msra.mxu3 %v751_v53  ;;  %1740 = vmatmul.msk.f32.vlgmr.msra.gmra.mxu2 %vm1051_vm0, %v2312_v30 }
 0x134   : > { %v2349_v58 = vpop.f32.mrf.mxu2  ;;  %v2351_v59 = vpop.f32.mrf.mxu3 }
 0x135   : > { %1260 = vmatpush.msra.mxu3 %v748_v54  ;;  %v779_v61 = vpop.f32.mrf.mxu0  ;;  %v814_v62 = vpop.f32.mrf.mxu1  ;;  %v882_v39 = vadd.f32 %v2351_v59, %v2349_v58 }
 0x136   : > { %v815_v26 = vadd.f32 %v814_v62, %v779_v61 }
 0x137   : > { %1261 = vmatpush.msra.mxu3 %v745_v60 }
 0x138   : > { %1733 = vmatmul.msk.f32.gmra.mxu1 %vm1051_vm0, %v2383_v14 }
 0x139   : > { %1262 = vmatpush.msra.mxu3 %v742_v63  ;;  %1721 = vmatmul.msk.f32.gmra.mxu0 %vm1051_vm0, %v2383_v14 }
 0x13a   : > { %1752 = vmatmul.msk.f32.vlgmr.msra.gmra.mxu3 %vm1051_vm0, %v2312_v30 }
 0x13b   : > { %1741 = vmatmul.msk.f32.gmra.mxu2 %vm1051_vm0, %v2321_v33 }
 0x13c   : > { %v2368_v1 = vpop.f32.mrf.mxu2  ;;  %v2370_v2 = vpop.f32.mrf.mxu3 }
 0x13d   : > { %v782_v3 = vpop.f32.mrf.mxu0  ;;  %v817_v4 = vpop.f32.mrf.mxu1  ;;  %v885_v36 = vadd.f32 %v2370_v2, %v2368_v1 }
 0x13e   : > { %v818_v56 = vadd.f32 %v817_v4, %v782_v3 }
 0x140   : > { %1734 = vmatmul.msk.f32.gmra.mxu1 %vm1051_vm0, %v2396_v6 }
 0x141   : > { %1722 = vmatmul.msk.f32.gmra.mxu0 %vm1051_vm0, %v2396_v6 }
 0x142   : > { %1753 = vmatmul.msk.f32.gmra.mxu3 %vm1051_vm0, %v2321_v33 }
 0x143   : > { %1742 = vmatmul.msk.f32.gmra.mxu2 %vm1051_vm0, %v2330_v41 }
 0x144   : > { %v852_v15 = vpop.f32.mrf.mxu2  ;;  %v887_v28 = vpop.f32.mrf.mxu3 }
 0x145   : > { %v785_v5 = vpop.f32.mrf.mxu0  ;;  %v820_v29 = vpop.f32.mrf.mxu1  ;;  %v888_v8 = vadd.f32 %v887_v28, %v852_v15 }
 0x146   : > { %v821_v20 = vadd.f32 %v820_v29, %v785_v5 }
 0x148   : > { %1735 = vmatmul.msk.f32.gmra.mxu1 %vm1051_vm0, %v2409_v43 }
 0x149   : > { %1723 = vmatmul.msk.f32.gmra.mxu0 %vm1051_vm0, %v2409_v43 }
 0x14a   : > { %1754 = vmatmul.msk.f32.gmra.mxu3 %vm1051_vm0, %v2330_v41 }
 0x14b   : > { %1743 = vmatmul.msk.f32.gmra.mxu2 %vm1051_vm0, %v2347_v55 }
 0x14c   : > { %v855_v7 = vpop.f32.mrf.mxu2  ;;  %v890_v10 = vpop.f32.mrf.mxu3 }
 0x14d   : > { %v788_v11 = vpop.f32.mrf.mxu0  ;;  %v823_v42 = vpop.f32.mrf.mxu1  ;;  %v891_v32 = vadd.f32 %v890_v10, %v855_v7 }
 0x14e   : > { %v824_v19 = vadd.f32 %v823_v42, %v788_v11 }
 0x150   : > { %1736 = vmatmul.msk.f32.gmra.mxu1 %vm1051_vm0, %v2422_v22 }
 0x151   : > { %1724 = vmatmul.msk.f32.gmra.mxu0 %vm1051_vm0, %v2422_v22 }
 0x152   : > { %1755 = vmatmul.msk.f32.gmra.mxu3 %vm1051_vm0, %v2347_v55 }
 0x153   : > { %1744 = vmatmul.msk.f32.gmra.mxu2 %vm1051_vm0, %v2366_v0 }
 0x154   : > { %v858_v12 = vpop.f32.mrf.mxu2  ;;  %v893_v13 = vpop.f32.mrf.mxu3 }
 0x155   : > { %v791_v16 = vpop.f32.mrf.mxu0  ;;  %v826_v17 = vpop.f32.mrf.mxu1  ;;  %v894_v27 = vadd.f32 %v893_v13, %v858_v12 }
 0x156   : > { %v827_v18 = vadd.f32 %v826_v17, %v791_v16 }
 0x158   : > { %1310 = vmatpush.msrb.mxu0 %v827_v18  ;;  %1737 = vmatmul.msk.f32.gmra.mxu1 %vm1051_vm0, %v2445_v35 }
 0x159   : > { %1725 = vmatmul.msk.f32.gmra.mxu0 %vm1051_vm0, %v2445_v35 }
 0x15a   : > { %1311 = vmatpush.msrb.mxu0 %v824_v19  ;;  %1756 = vmatmul.msk.f32.gmra.mxu3 %vm1051_vm0, %v2366_v0 }
 0x15b   : > { %1745 = vmatmul.msk.f32.gmra.mxu2 %vm1051_vm0, %v2383_v14 }
 0x15c   : > { %v861_v57 = vpop.f32.mrf.mxu2  ;;  %v896_v21 = vpop.f32.mrf.mxu3  ;;  %1312 = vmatpush.msrb.mxu0 %v821_v20 }
 0x15d   : > { %v897_v23 = vadd.f32 %v896_v21, %v861_v57  ;;  %v2424_v24 = vpop.f32.mrf.mxu0  ;;  %v2426_v25 = vpop.f32.mrf.mxu1 }
 0x15e   : > { %1313 = vmatpush.msrb.mxu0 %v818_v56  ;;  %v952_v10 = vadd.f32 %v2426_v25, %v2424_v24 }
 0x15f   : > { %1363 = vmatpush.msrb.mxu1 %v897_v23 }
 0x160   : > { %1314 = vmatpush.msrb.mxu0 %v815_v26  ;;  %1738 = vmatmul.msk.f32.gmra.mxu1 %vm1051_vm0, %v2462_v45 }
 0x161   : > { %1364 = vmatpush.msrb.mxu1 %v894_v27  ;;  %1726 = vmatmul.msk.f32.gmra.mxu0 %vm1051_vm0, %v2462_v45 }
 0x162   : > { %1315 = vmatpush.msrb.mxu0 %v812_v31  ;;  %1757 = vmatmul.msk.f32.gmra.mxu3 %vm1051_vm0, %v2383_v14 }
 0x163   : > { %1365 = vmatpush.msrb.mxu1 %v891_v32  ;;  %1746 = vmatmul.msk.f32.gmra.mxu2 %vm1051_vm0, %v2396_v6 }
 0x164   : > { %v2438_v9 = vpop.f32.mrf.mxu2  ;;  %v2440_v34 = vpop.f32.mrf.mxu3 }
 0x165   : > { %1366 = vmatpush.msrb.mxu1 %v888_v8  ;;  %v919_v37 = vpop.f32.mrf.mxu0  ;;  %v954_v38 = vpop.f32.mrf.mxu1  ;;  %v1022_v13 = vadd.f32 %v2440_v34, %v2438_v9 }
 0x166   : > { %v955_v29 = vadd.f32 %v954_v38, %v919_v37 }
 0x167   : > { %1367 = vmatpush.msrb.mxu1 %v885_v36 }
 0x168   : > { %1739 = vmatmul.msk.f32.gmra.mxu1 %vm1051_vm0, %v2475_v50 }
 0x169   : > { %1368 = vmatpush.msrb.mxu1 %v882_v39  ;;  %1727 = vmatmul.msk.f32.gmra.mxu0 %vm1051_vm0, %v2475_v50 }
 0x16a   : > { %1758 = vmatmul.msk.f32.gmra.mxu3 %vm1051_vm0, %v2396_v6 }
 0x16b   : > { %1747 = vmatmul.msk.f32.gmra.mxu2 %vm1051_vm0, %v2409_v43 }
 0x16c   : > { %v989_v40 = vpop.f32.mrf.mxu2  ;;  %v1024_v44 = vpop.f32.mrf.mxu3 }
 0x16d   : > { %v922_v46 = vpop.f32.mrf.mxu0  ;;  %v957_v47 = vpop.f32.mrf.mxu1  ;;  %v1025_v12 = vadd.f32 %v1024_v44, %v989_v40 }
 0x16e   : > { %v958_v4 = vadd.f32 %v957_v47, %v922_v46 }
 0x170   : > { %1776 = vmatmul.msk.f32.vlgmr.msrb.gmra.mxu1 %vm1051_vm0, %v2312_v30 }
 0x171   : > { %1764 = vmatmul.msk.f32.vlgmr.msrb.gmra.mxu0 %vm1051_vm0, %v2312_v30 }
 0x172   : > { %1759 = vmatmul.msk.f32.gmra.mxu3 %vm1051_vm0, %v2409_v43 }
 0x173   : > { %1748 = vmatmul.msk.f32.gmra.mxu2 %vm1051_vm0, %v2422_v22 }
 0x174   : > { %v992_v48 = vpop.f32.mrf.mxu2  ;;  %v1027_v49 = vpop.f32.mrf.mxu3 }
 0x175   : > { %v925_v51 = vpop.f32.mrf.mxu0  ;;  %v960_v52 = vpop.f32.mrf.mxu1  ;;  %v1028_v42 = vadd.f32 %v1027_v49, %v992_v48 }
 0x176   : > { %v961_v3 = vadd.f32 %v960_v52, %v925_v51 }
 0x178   : > { %1777 = vmatmul.msk.f32.gmra.mxu1 %vm1051_vm0, %v2321_v33 }
 0x179   : > { %1765 = vmatmul.msk.f32.gmra.mxu0 %vm1051_vm0, %v2321_v33 }
 0x17a   : > { %1760 = vmatmul.msk.f32.gmra.mxu3 %vm1051_vm0, %v2422_v22 }
 0x17b   : > { %1749 = vmatmul.msk.f32.gmra.mxu2 %vm1051_vm0, %v2445_v35 }
 0x17c   : > { %v995_v53 = vpop.f32.mrf.mxu2  ;;  %v1030_v54 = vpop.f32.mrf.mxu3 }
 0x17d   : > { %v963_v58 = vpop.f32.mrf.mxu1  ;;  %v1031_v11 = vadd.f32 %v1030_v54, %v995_v53 }
 0x17e   : > { %v928_v59 = vpop.f32.mrf.mxu0 }
 0x17f   : > { %v964_v2 = vadd.f32 %v963_v58, %v928_v59 }
 0x180   : > { %1778 = vmatmul.msk.f32.gmra.mxu1 %vm1051_vm0, %v2330_v41 }
 0x181   : > { %1766 = vmatmul.msk.f32.gmra.mxu0 %vm1051_vm0, %v2330_v41 }
 0x182   : > { %1761 = vmatmul.msk.f32.gmra.mxu3 %vm1051_vm0, %v2445_v35 }
 0x183   : > { %1750 = vmatmul.msk.f32.gmra.mxu2 %vm1051_vm0, %v2462_v45 }
 0x184   : > { %v998_v60 = vpop.f32.mrf.mxu2 }
 0x185   : > { %v1033_v61 = vpop.f32.mrf.mxu3  ;;  %v966_v62 = vpop.f32.mrf.mxu1 }
 0x186   : > { %v931_v63 = vpop.f32.mrf.mxu0  ;;  %v1034_v7 = vadd.f32 %v1033_v61, %v998_v60 }
 0x187   : > { %v967_v1 = vadd.f32 %v966_v62, %v931_v63 }
 0x188   : > { %1779 = vmatmul.msk.f32.gmra.mxu1 %vm1051_vm0, %v2347_v55 }
 0x189   : > { %1416 = vmatpush.msrb.mxu2 %v967_v1  ;;  %1767 = vmatmul.msk.f32.gmra.mxu0 %vm1051_vm0, %v2347_v55 }
 0x18a   : > { %1762 = vmatmul.msk.f32.gmra.mxu3 %vm1051_vm0, %v2462_v45 }
 0x18b   : > { %1417 = vmatpush.msrb.mxu2 %v964_v2 }
 0x18c   : > { %1751 = vmatmul.msk.f32.gmra.mxu2 %vm1051_vm0, %v2475_v50 }
 0x18d   : > { %v1001_v15 = vpop.f32.mrf.mxu2  ;;  %v1036_v28 = vpop.f32.mrf.mxu3  ;;  %1418 = vmatpush.msrb.mxu2 %v961_v3 }
 0x18e   : > { %v1037_v5 = vadd.f32 %v1036_v28, %v1001_v15  ;;  %v1105_v16 = vpop.f32.mrf.mxu0  ;;  %v1158_v17 = vpop.f32.mrf.mxu1 }
 0x18f   : > { %1419 = vmatpush.msrb.mxu2 %v958_v4  ;;  %1512 = vst [vmem:[%s2522_s29] sm:$0xff] %v1105_v16 }
 0x190   : > { %1469 = vmatpush.msrb.mxu3 %v1037_v5  ;;  %1513 = vst [vmem:[%s2522_s29 + $0x8] sm:$0xff] %v1158_v17  ;;  %1780 = vmatmul.msk.f32.gmra.mxu1 %vm1051_vm0, %v2366_v0 }
 0x191   : > { %1420 = vmatpush.msrb.mxu2 %v955_v29  ;;  %1768 = vmatmul.msk.f32.gmra.mxu0 %vm1051_vm0, %v2366_v0 }
 0x192   : > { %1470 = vmatpush.msrb.mxu3 %v1034_v7 }
 0x193   : > { %1421 = vmatpush.msrb.mxu2 %v952_v10  ;;  %1763 = vmatmul.msk.f32.gmra.mxu3 %vm1051_vm0, %v2475_v50 }
 0x194   : > { %1471 = vmatpush.msrb.mxu3 %v1031_v11  ;;  %1788 = vmatmul.msk.f32.vlgmr.msrb.gmra.mxu2 %vm1051_vm0, %v2312_v30 }
 0x196   : > { %1472 = vmatpush.msrb.mxu3 %v1028_v42  ;;  %v1161_v18 = vpop.f32.mrf.mxu1 }
 0x197   : > { %1521 = vst [vmem:[%s2522_s29 + $0x48] sm:$0xff] %v1161_v18 }
 0x198   : > { %1473 = vmatpush.msrb.mxu3 %v1025_v12  ;;  %1781 = vmatmul.msk.f32.gmra.mxu1 %vm1051_vm0, %v2383_v14 }
 0x199   : > { %1769 = vmatmul.msk.f32.gmra.mxu0 %vm1051_vm0, %v2383_v14 }
 0x19a   : > { %1474 = vmatpush.msrb.mxu3 %v1022_v13 }
 0x19b   : > { %1800 = vmatmul.msk.f32.vlgmr.msrb.gmra.mxu3 %vm1051_vm0, %v2312_v30  ;;  %v1108_v30 = vpop.f32.mrf.mxu0 }
 0x19c   : > { %1789 = vmatmul.msk.f32.gmra.mxu2 %vm1051_vm0, %v2321_v33  ;;  %1520 = vst [vmem:[%s2522_s29 + $0x40] sm:$0xff] %v1108_v30 }
 0x1a0   : > { %1782 = vmatmul.msk.f32.gmra.mxu1 %vm1051_vm0, %v2396_v6 }
 0x1a1   : > { %1770 = vmatmul.msk.f32.gmra.mxu0 %vm1051_vm0, %v2396_v6 }
 0x1a3   : > { %1801 = vmatmul.msk.f32.gmra.mxu3 %vm1051_vm0, %v2321_v33  ;;  %v1111_v19 = vpop.f32.mrf.mxu0  ;;  %v1164_v33 = vpop.f32.mrf.mxu1 }
 0x1a4   : > { %1790 = vmatmul.msk.f32.gmra.mxu2 %vm1051_vm0, %v2330_v41  ;;  %1528 = vst [vmem:[%s2522_s29 + $0x80] sm:$0xff] %v1111_v19 }
 0x1a5   : > { %1529 = vst [vmem:[%s2522_s29 + $0x88] sm:$0xff] %v1164_v33 }
 0x1a8   : > { %1783 = vmatmul.msk.f32.gmra.mxu1 %vm1051_vm0, %v2409_v43 }
 0x1a9   : > { %1771 = vmatmul.msk.f32.gmra.mxu0 %vm1051_vm0, %v2409_v43 }
 0x1ab   : > { %1802 = vmatmul.msk.f32.gmra.mxu3 %vm1051_vm0, %v2330_v41  ;;  %v1114_v41 = vpop.f32.mrf.mxu0  ;;  %v1167_v20 = vpop.f32.mrf.mxu1 }
 0x1ac   : > { %1791 = vmatmul.msk.f32.gmra.mxu2 %vm1051_vm0, %v2347_v55  ;;  %1536 = vst [vmem:[%s2522_s29 + $0xc0] sm:$0xff] %v1114_v41 }
 0x1ad   : > { %1537 = vst [vmem:[%s2522_s29 + $0xc8] sm:$0xff] %v1167_v20 }
 0x1b0   : > { %1784 = vmatmul.msk.f32.gmra.mxu1 %vm1051_vm0, %v2422_v22 }
 0x1b1   : > { %1772 = vmatmul.msk.f32.gmra.mxu0 %vm1051_vm0, %v2422_v22 }
 0x1b3   : > { %1803 = vmatmul.msk.f32.gmra.mxu3 %vm1051_vm0, %v2347_v55  ;;  %v1117_v55 = vpop.f32.mrf.mxu0  ;;  %v1170_v57 = vpop.f32.mrf.mxu1 }
 0x1b4   : > { %1792 = vmatmul.msk.f32.gmra.mxu2 %vm1051_vm0, %v2366_v0  ;;  %1544 = vst [vmem:[%s2522_s29 + $0x100] sm:$0xff] %v1117_v55 }
 0x1b5   : > { %1545 = vst [vmem:[%s2522_s29 + $0x108] sm:$0xff] %v1170_v57 }
 0x1b6   : > { %v1211_v56 = vpop.f32.mrf.mxu2 }
 0x1b7   : > { %1514 = vst [vmem:[%s2522_s29 + $0x10] sm:$0xff] %v1211_v56 }
 0x1b8   : > { %1785 = vmatmul.msk.f32.gmra.mxu1 %vm1051_vm0, %v2445_v35 }
 0x1b9   : > { %1773 = vmatmul.msk.f32.gmra.mxu0 %vm1051_vm0, %v2445_v35 }
 0x1bb   : > { %1804 = vmatmul.msk.f32.gmra.mxu3 %vm1051_vm0, %v2366_v0  ;;  %v1120_v0 = vpop.f32.mrf.mxu0  ;;  %v1173_v24 = vpop.f32.mrf.mxu1 }
 0x1bc   : > { %1793 = vmatmul.msk.f32.gmra.mxu2 %vm1051_vm0, %v2383_v14  ;;  %1552 = vst [vmem:[%s2522_s29 + $0x140] sm:$0xff] %v1120_v0 }
 0x1bd   : > { %v1264_v21 = vpop.f32.mrf.mxu3  ;;  %1553 = vst [vmem:[%s2522_s29 + $0x148] sm:$0xff] %v1173_v24 }
 0x1be   : > { %1515 = vst [vmem:[%s2522_s29 + $0x18] sm:$0xff] %v1264_v21  ;;  %v1214_v23 = vpop.f32.mrf.mxu2 }
 0x1bf   : > { %1522 = vst [vmem:[%s2522_s29 + $0x50] sm:$0xff] %v1214_v23 }
 0x1c0   : > { %1786 = vmatmul.msk.f32.gmra.mxu1 %vm1051_vm0, %v2462_v45 }
 0x1c1   : > { %1774 = vmatmul.msk.f32.gmra.mxu0 %vm1051_vm0, %v2462_v45 }
 0x1c3   : > { %1805 = vmatmul.msk.f32.gmra.mxu3 %vm1051_vm0, %v2383_v14  ;;  %v1123_v14 = vpop.f32.mrf.mxu0  ;;  %v1176_v27 = vpop.f32.mrf.mxu1 }
 0x1c4   : > { %1794 = vmatmul.msk.f32.gmra.mxu2 %vm1051_vm0, %v2396_v6  ;;  %1560 = vst [vmem:[%s2522_s29 + $0x180] sm:$0xff] %v1123_v14 }
 0x1c5   : > { %v1267_v25 = vpop.f32.mrf.mxu3  ;;  %1561 = vst [vmem:[%s2522_s29 + $0x188] sm:$0xff] %v1176_v27 }
 0x1c6   : > { %1523 = vst [vmem:[%s2522_s29 + $0x58] sm:$0xff] %v1267_v25  ;;  %v1217_v26 = vpop.f32.mrf.mxu2 }
 0x1c7   : > { %1530 = vst [vmem:[%s2522_s29 + $0x90] sm:$0xff] %v1217_v26 }
 0x1c8   : > { %1787 = vmatmul.msk.f32.gmra.mxu1 %vm1051_vm0, %v2475_v50 }
 0x1c9   : > { %1775 = vmatmul.msk.f32.gmra.mxu0 %vm1051_vm0, %v2475_v50 }
 0x1cb   : > { %1806 = vmatmul.msk.f32.gmra.mxu3 %vm1051_vm0, %v2396_v6  ;;  %v1126_v6 = vpop.f32.mrf.mxu0  ;;  %v1179_v8 = vpop.f32.mrf.mxu1 }
 0x1cc   : > { %1795 = vmatmul.msk.f32.gmra.mxu2 %vm1051_vm0, %v2409_v43  ;;  %1568 = vst [vmem:[%s2522_s29 + $0x1c0] sm:$0xff] %v1126_v6 }
 0x1cd   : > { %v1270_v31 = vpop.f32.mrf.mxu3  ;;  %1569 = vst [vmem:[%s2522_s29 + $0x1c8] sm:$0xff] %v1179_v8 }
 0x1ce   : > { %1531 = vst [vmem:[%s2522_s29 + $0x98] sm:$0xff] %v1270_v31  ;;  %v1220_v32 = vpop.f32.mrf.mxu2 }
 0x1cf   : > { %1538 = vst [vmem:[%s2522_s29 + $0xd0] sm:$0xff] %v1220_v32 }
 0x1d3   : > { %1807 = vmatmul.msk.f32.gmra.mxu3 %vm1051_vm0, %v2409_v43  ;;  %v1129_v43 = vpop.f32.mrf.mxu0  ;;  %v1182_v36 = vpop.f32.mrf.mxu1 }
 0x1d4   : > { %1796 = vmatmul.msk.f32.gmra.mxu2 %vm1051_vm0, %v2422_v22  ;;  %1576 = vst [vmem:[%s2522_s29 + $0x200] sm:$0xff] %v1129_v43 }
 0x1d5   : > { %v1273_v9 = vpop.f32.mrf.mxu3  ;;  %1577 = vst [vmem:[%s2522_s29 + $0x208] sm:$0xff] %v1182_v36 }
 0x1d6   : > { %1539 = vst [vmem:[%s2522_s29 + $0xd8] sm:$0xff] %v1273_v9  ;;  %v1223_v34 = vpop.f32.mrf.mxu2 }
 0x1d7   : > { %1546 = vst [vmem:[%s2522_s29 + $0x110] sm:$0xff] %v1223_v34 }
 0x1db   : > { %1808 = vmatmul.msk.f32.gmra.mxu3 %vm1051_vm0, %v2422_v22  ;;  %v1132_v22 = vpop.f32.mrf.mxu0  ;;  %v1185_v39 = vpop.f32.mrf.mxu1 }
 0x1dc   : > { %1797 = vmatmul.msk.f32.gmra.mxu2 %vm1051_vm0, %v2445_v35  ;;  %1584 = vst [vmem:[%s2522_s29 + $0x240] sm:$0xff] %v1132_v22 }
 0x1dd   : > { %v1276_v37 = vpop.f32.mrf.mxu3  ;;  %1585 = vst [vmem:[%s2522_s29 + $0x248] sm:$0xff] %v1185_v39 }
 0x1de   : > { %1547 = vst [vmem:[%s2522_s29 + $0x118] sm:$0xff] %v1276_v37  ;;  %v1226_v38 = vpop.f32.mrf.mxu2 }
 0x1df   : > { %1554 = vst [vmem:[%s2522_s29 + $0x150] sm:$0xff] %v1226_v38 }
 0x1e3   : > { %1809 = vmatmul.msk.f32.gmra.mxu3 %vm1051_vm0, %v2445_v35  ;;  %v1135_v35 = vpop.f32.mrf.mxu0  ;;  %v1188_v46 = vpop.f32.mrf.mxu1 }
 0x1e4   : > { %1798 = vmatmul.msk.f32.gmra.mxu2 %vm1051_vm0, %v2462_v45  ;;  %1592 = vst [vmem:[%s2522_s29 + $0x280] sm:$0xff] %v1135_v35 }
 0x1e5   : > { %v1279_v40 = vpop.f32.mrf.mxu3  ;;  %1593 = vst [vmem:[%s2522_s29 + $0x288] sm:$0xff] %v1188_v46 }
 0x1e6   : > { %1555 = vst [vmem:[%s2522_s29 + $0x158] sm:$0xff] %v1279_v40  ;;  %v1229_v44 = vpop.f32.mrf.mxu2 }
 0x1e7   : > { %1562 = vst [vmem:[%s2522_s29 + $0x190] sm:$0xff] %v1229_v44 }
 0x1eb   : > { %1810 = vmatmul.msk.f32.gmra.mxu3 %vm1051_vm0, %v2462_v45  ;;  %v1138_v45 = vpop.f32.mrf.mxu0  ;;  %v1191_v49 = vpop.f32.mrf.mxu1 }
 0x1ec   : > { %1799 = vmatmul.msk.f32.gmra.mxu2 %vm1051_vm0, %v2475_v50  ;;  %1600 = vst [vmem:[%s2522_s29 + $0x2c0] sm:$0xff] %v1138_v45 }
 0x1ed   : > { %v1282_v47 = vpop.f32.mrf.mxu3  ;;  %1601 = vst [vmem:[%s2522_s29 + $0x2c8] sm:$0xff] %v1191_v49 }
 0x1ee   : > { %1563 = vst [vmem:[%s2522_s29 + $0x198] sm:$0xff] %v1282_v47  ;;  %v1232_v48 = vpop.f32.mrf.mxu2 }
 0x1ef   : > { %1570 = vst [vmem:[%s2522_s29 + $0x1d0] sm:$0xff] %v1232_v48 }
 0x1f3   : > { %1811 = vmatmul.msk.f32.gmra.mxu3 %vm1051_vm0, %v2475_v50  ;;  %v1317_v53 = vpop.f32.mrf.mxu0  ;;  %v1370_v54 = vpop.f32.mrf.mxu1 }
 0x1f4   : > { %1516 = vst [vmem:[%s2522_s29 + $0x20] sm:$0xff] %v1317_v53 }
 0x1f5   : > { %v1285_v51 = vpop.f32.mrf.mxu3  ;;  %1517 = vst [vmem:[%s2522_s29 + $0x28] sm:$0xff] %v1370_v54 }
 0x1f6   : > { %1571 = vst [vmem:[%s2522_s29 + $0x1d8] sm:$0xff] %v1285_v51  ;;  %v1235_v52 = vpop.f32.mrf.mxu2 }
 0x1f7   : > { %1578 = vst [vmem:[%s2522_s29 + $0x210] sm:$0xff] %v1235_v52 }
 0x1fb   : > { %v1320_v59 = vpop.f32.mrf.mxu0  ;;  %v1373_v60 = vpop.f32.mrf.mxu1 }
 0x1fc   : > { %1524 = vst [vmem:[%s2522_s29 + $0x60] sm:$0xff] %v1320_v59 }
 0x1fd   : > { %v1288_v58 = vpop.f32.mrf.mxu3  ;;  %1525 = vst [vmem:[%s2522_s29 + $0x68] sm:$0xff] %v1373_v60 }
 0x1fe   : > { %1579 = vst [vmem:[%s2522_s29 + $0x218] sm:$0xff] %v1288_v58  ;;  %v1238_v50 = vpop.f32.mrf.mxu2 }
 0x1ff   : > { %1586 = vst [vmem:[%s2522_s29 + $0x250] sm:$0xff] %v1238_v50 }
 0x203   : > { %v1323_v63 = vpop.f32.mrf.mxu0  ;;  %v1376_v1 = vpop.f32.mrf.mxu1 }
 0x204   : > { %1532 = vst [vmem:[%s2522_s29 + $0xa0] sm:$0xff] %v1323_v63 }
 0x205   : > { %v1291_v61 = vpop.f32.mrf.mxu3  ;;  %1533 = vst [vmem:[%s2522_s29 + $0xa8] sm:$0xff] %v1376_v1 }
 0x206   : > { %1587 = vst [vmem:[%s2522_s29 + $0x258] sm:$0xff] %v1291_v61  ;;  %v1241_v62 = vpop.f32.mrf.mxu2 }
 0x207   : > { %1594 = vst [vmem:[%s2522_s29 + $0x290] sm:$0xff] %v1241_v62 }
 0x20b   : > { %v1326_v4 = vpop.f32.mrf.mxu0  ;;  %v1379_v15 = vpop.f32.mrf.mxu1 }
 0x20c   : > { %1540 = vst [vmem:[%s2522_s29 + $0xe0] sm:$0xff] %v1326_v4 }
 0x20d   : > { %v1294_v2 = vpop.f32.mrf.mxu3  ;;  %1541 = vst [vmem:[%s2522_s29 + $0xe8] sm:$0xff] %v1379_v15 }
 0x20e   : > { %1595 = vst [vmem:[%s2522_s29 + $0x298] sm:$0xff] %v1294_v2 }
 0x20f   : > { %v1244_v3 = vpop.f32.mrf.mxu2 }
 0x210   : > { %1602 = vst [vmem:[%s2522_s29 + $0x2d0] sm:$0xff] %v1244_v3 }
 0x213   : > { %v1329_v29 = vpop.f32.mrf.mxu0  ;;  %v1382_v7 = vpop.f32.mrf.mxu1 }
 0x214   : > { %1548 = vst [vmem:[%s2522_s29 + $0x120] sm:$0xff] %v1329_v29 }
 0x215   : > { %1549 = vst [vmem:[%s2522_s29 + $0x128] sm:$0xff] %v1382_v7 }
 0x216   : > { %v1297_v28 = vpop.f32.mrf.mxu3 }
 0x217   : > { %1603 = vst [vmem:[%s2522_s29 + $0x2d8] sm:$0xff] %v1297_v28  ;;  %v1423_v5 = vpop.f32.mrf.mxu2 }
 0x218   : > { %1518 = vst [vmem:[%s2522_s29 + $0x30] sm:$0xff] %v1423_v5 }
 0x21b   : > { %v1332_v42 = vpop.f32.mrf.mxu0  ;;  %v1385_v12 = vpop.f32.mrf.mxu1 }
 0x21c   : > { %1556 = vst [vmem:[%s2522_s29 + $0x160] sm:$0xff] %v1332_v42 }
 0x21d   : > { %1557 = vst [vmem:[%s2522_s29 + $0x168] sm:$0xff] %v1385_v12 }
 0x21e   : > { %v1476_v10 = vpop.f32.mrf.mxu3 }
 0x21f   : > { %1519 = vst [vmem:[%s2522_s29 + $0x38] sm:$0xff] %v1476_v10  ;;  %v1426_v11 = vpop.f32.mrf.mxu2 }
 0x220   : > { %1526 = vst [vmem:[%s2522_s29 + $0x70] sm:$0xff] %v1426_v11 }
 0x223   : > { %v1335_v17 = vpop.f32.mrf.mxu0  ;;  %v1388_v30 = vpop.f32.mrf.mxu1 }
 0x224   : > { %1564 = vst [vmem:[%s2522_s29 + $0x1a0] sm:$0xff] %v1335_v17 }
 0x225   : > { %1565 = vst [vmem:[%s2522_s29 + $0x1a8] sm:$0xff] %v1388_v30 }
 0x226   : > { %v1479_v13 = vpop.f32.mrf.mxu3 }
 0x227   : > { %1527 = vst [vmem:[%s2522_s29 + $0x78] sm:$0xff] %v1479_v13  ;;  %v1429_v16 = vpop.f32.mrf.mxu2 }
 0x228   : > { %1534 = vst [vmem:[%s2522_s29 + $0xb0] sm:$0xff] %v1429_v16 }
 0x22b   : > { %v1338_v33 = vpop.f32.mrf.mxu0  ;;  %v1391_v41 = vpop.f32.mrf.mxu1 }
 0x22c   : > { %1572 = vst [vmem:[%s2522_s29 + $0x1e0] sm:$0xff] %v1338_v33 }
 0x22d   : > { %1573 = vst [vmem:[%s2522_s29 + $0x1e8] sm:$0xff] %v1391_v41 }
 0x22e   : > { %v1482_v18 = vpop.f32.mrf.mxu3 }
 0x22f   : > { %1535 = vst [vmem:[%s2522_s29 + $0xb8] sm:$0xff] %v1482_v18  ;;  %v1432_v19 = vpop.f32.mrf.mxu2 }
 0x230   : > { %1542 = vst [vmem:[%s2522_s29 + $0xf0] sm:$0xff] %v1432_v19 }
 0x233   : > { %v1341_v55 = vpop.f32.mrf.mxu0  ;;  %v1394_v57 = vpop.f32.mrf.mxu1 }
 0x234   : > { %1580 = vst [vmem:[%s2522_s29 + $0x220] sm:$0xff] %v1341_v55 }
 0x235   : > { %1581 = vst [vmem:[%s2522_s29 + $0x228] sm:$0xff] %v1394_v57 }
 0x236   : > { %v1485_v20 = vpop.f32.mrf.mxu3 }
 0x237   : > { %1543 = vst [vmem:[%s2522_s29 + $0xf8] sm:$0xff] %v1485_v20  ;;  %v1435_v56 = vpop.f32.mrf.mxu2 }
 0x238   : > { %1550 = vst [vmem:[%s2522_s29 + $0x130] sm:$0xff] %v1435_v56 }
 0x23b   : > { %v1344_v0 = vpop.f32.mrf.mxu0  ;;  %v1397_v24 = vpop.f32.mrf.mxu1 }
 0x23c   : > { %1588 = vst [vmem:[%s2522_s29 + $0x260] sm:$0xff] %v1344_v0 }
 0x23d   : > { %1589 = vst [vmem:[%s2522_s29 + $0x268] sm:$0xff] %v1397_v24 }
 0x23e   : > { %v1488_v21 = vpop.f32.mrf.mxu3 }
 0x23f   : > { %1551 = vst [vmem:[%s2522_s29 + $0x138] sm:$0xff] %v1488_v21  ;;  %v1438_v23 = vpop.f32.mrf.mxu2 }
 0x240   : > { %1558 = vst [vmem:[%s2522_s29 + $0x170] sm:$0xff] %v1438_v23 }
 0x243   : > { %v1347_v14 = vpop.f32.mrf.mxu0  ;;  %v1400_v27 = vpop.f32.mrf.mxu1 }
 0x244   : > { %1596 = vst [vmem:[%s2522_s29 + $0x2a0] sm:$0xff] %v1347_v14 }
 0x245   : > { %1597 = vst [vmem:[%s2522_s29 + $0x2a8] sm:$0xff] %v1400_v27 }
 0x246   : > { %v1491_v25 = vpop.f32.mrf.mxu3 }
 0x247   : > { %1559 = vst [vmem:[%s2522_s29 + $0x178] sm:$0xff] %v1491_v25  ;;  %v1441_v26 = vpop.f32.mrf.mxu2 }
 0x248   : > { %1566 = vst [vmem:[%s2522_s29 + $0x1b0] sm:$0xff] %v1441_v26 }
 0x24b   : > { %v1350_v6 = vpop.f32.mrf.mxu0  ;;  %v1403_v8 = vpop.f32.mrf.mxu1 }
 0x24c   : > { %1604 = vst [vmem:[%s2522_s29 + $0x2e0] sm:$0xff] %v1350_v6 }
 0x24d   : > { %1605 = vst [vmem:[%s2522_s29 + $0x2e8] sm:$0xff] %v1403_v8 }
 0x24e   : > { %v1494_v31 = vpop.f32.mrf.mxu3 }
 0x24f   : > { %1567 = vst [vmem:[%s2522_s29 + $0x1b8] sm:$0xff] %v1494_v31  ;;  %v1444_v32 = vpop.f32.mrf.mxu2 }
 0x250   : > { %1574 = vst [vmem:[%s2522_s29 + $0x1f0] sm:$0xff] %v1444_v32 }
 0x256   : > { %v1497_v9 = vpop.f32.mrf.mxu3 }
 0x257   : > { %1575 = vst [vmem:[%s2522_s29 + $0x1f8] sm:$0xff] %v1497_v9  ;;  %v1447_v34 = vpop.f32.mrf.mxu2 }
 0x258   : > { %1582 = vst [vmem:[%s2522_s29 + $0x230] sm:$0xff] %v1447_v34 }
 0x25e   : > { %v1500_v43 = vpop.f32.mrf.mxu3 }
 0x25f   : > { %1583 = vst [vmem:[%s2522_s29 + $0x238] sm:$0xff] %v1500_v43  ;;  %v1450_v36 = vpop.f32.mrf.mxu2 }
 0x260   : > { %1590 = vst [vmem:[%s2522_s29 + $0x270] sm:$0xff] %v1450_v36 }
 0x266   : > { %v1503_v37 = vpop.f32.mrf.mxu3 }
 0x267   : > { %1591 = vst [vmem:[%s2522_s29 + $0x278] sm:$0xff] %v1503_v37  ;;  %v1453_v38 = vpop.f32.mrf.mxu2 }
 0x268   : > { %1598 = vst [vmem:[%s2522_s29 + $0x2b0] sm:$0xff] %v1453_v38 }
 0x26e   : > { %v1506_v22 = vpop.f32.mrf.mxu3 }
 0x26f   : > { %1599 = vst [vmem:[%s2522_s29 + $0x2b8] sm:$0xff] %v1506_v22  ;;  %v1456_v39 = vpop.f32.mrf.mxu2 }
 0x270   : > { %1606 = vst [vmem:[%s2522_s29 + $0x2f0] sm:$0xff] %v1456_v39 }
 0x276   : > { %v1509_v40 = vpop.f32.mrf.mxu3 }
 0x277   : > { %1607 = vst [vmem:[%s2522_s29 + $0x2f8] sm:$0xff] %v1509_v40 }
 0x278   : > { %1975 = shalt.err (!%p1972_p10)
}
 0x279   : > { %s2025_s10 = smov 1024   ;;  %s2026_s24 = smov 64  }
 0x27a   : > { %1831 = dma.vmem_to_hbm [thread:$0]  (%p2114_p7), %s1623_s8, 12288, %s1625_s11, %s1609_s21, %s2025_s10, %s2025_s10, %s2026_s24  }
 0x27b PF: > { %s1639_s27 = sand.u32 1, %s2006_s12   ;;  %p2737_p12 = scmp.ge.s32.totalorder %s2018_s15, 2 }
 0x27c   : > { %s1640_s28 = scalar_lea.sflag [#allocation4], %s1639_s27 }
 0x27d   : > { %p1842_p13 = pnand %p2737_p12, %p2082_p6 }
 0x27f   : > { %p1843_p0 = pneg %p1842_p13 }
 0x281   : > { %2001 = dma.done.wait (%p1843_p0), %s1640_s28, 12288  }
 0x282   : > { %2003 = vsyncadd (%p1843_p0), %s1640_s28, 4294955008  ;;  %p17_p3 = scmp.ge.s32.totalorder %s2100_s26, 4   ;;  %s2738_s12 = smov %s2010_s13 }
 0x283   : > { %s2739_s13 = smov %s2014_s14  ;;  %s2740_s14 = smov %s2110_s4 }
 0x284   : > { %s2741_s15 = smov %s2100_s26  ;;  %19 = sbr.rel (!%p17_p3) target bundleno = 6 (0x6), region = 81 }
 0x289   :  { %1646 = vsyncpa [#allocation3], 1 }
 0x28a   :  { %1648 = vsyncpa [#allocation3 + $0x1], 1 }
 0x28b   :  { %1649 = vsyncpa [#allocation6], 1 }
 0x28c   :  { %1650 = vsyncpa [#allocation4], 1 }
 0x28d   :  { %1652 = vsyncpa [#allocation4 + $0x1], 1 }

</bundles_post_ra>
